<compile_context>
chip_gen: v6e
topology: v6e:2x2x1
jax: 0.10.0
libtpu: 0.0.40
codegen_flags: <defaults>
</compile_context>

<pallas_src>
import jax
import jax.numpy as jnp
from jax.experimental import pallas as pl
from jax.experimental.pallas import tpu as pltpu


# --------------------- fused: maxpool(2,2) + flatten + 3x Linear ---------------------
def _fused_tail_kernel(x4_ref, w1_ref, b1_ref, w2_ref, b2_ref, w3_ref, b3_ref, o_ref):
    # features1: MaxPool2d(2, 2).  The 4 elements of each pooling window were
    # stacked on axis 0 by the wrapper, already in torch.flatten(x, 1) order.
    x = jnp.maximum(jnp.maximum(x4_ref[0], x4_ref[1]),
                    jnp.maximum(x4_ref[2], x4_ref[3]))              # (N, Din)
    # features2: AdaptiveAvgPool2d((7,7)) is identity here (pooled map is 7x7).
    # features3: Linear -> ReLU -> Linear -> ReLU -> Linear (Dropout = identity).
    h = jnp.dot(x, w1_ref[...], preferred_element_type=jnp.float32) + b1_ref[...]
    h = jnp.maximum(h, 0.0)
    h = jnp.dot(h, w2_ref[...], preferred_element_type=jnp.float32) + b2_ref[...]
    h = jnp.maximum(h, 0.0)
    h = jnp.dot(h, w3_ref[...], preferred_element_type=jnp.float32) + b3_ref[...]
    o_ref[...] = h.astype(o_ref.dtype)


def second_model_forward(x_nchw, params):
    N, C, H, W = x_nchw.shape
    assert H % 2 == 0 and W % 2 == 0
    Hp, Wp = H // 2, W // 2
    # AdaptiveAvgPool2d((7,7)) on a 7x7 pooled map is exactly identity.
    assert Hp == 7 and Wp == 7
    # TODO(synk): general AdaptiveAvgPool2d binning when the pooled map is not 7x7.

    (w1, b1), (w2, b2), (w3, b3) = params
    d_in = C * Hp * Wp
    d_hidden = w1.shape[1]
    d_out = w3.shape[1]
    assert w1.shape[0] == d_in  # NOTE: weights are (Din, Dout), i.e. PyTorch W^T.

    # Single cheap XLA rearrange: stack the 4 elements of each 2x2 window on a
    # leading axis, flattened in torch.flatten(x, 1) order (c*Hp*Wp + i*Wp + j).
    x4 = x_nchw.reshape(N, C, Hp, 2, Wp, 2)
    x4 = jnp.transpose(x4, (3, 5, 0, 1, 2, 4)).reshape(4, N, d_in)

    return pl.pallas_call(
        _fused_tail_kernel,
        out_shape=jax.ShapeDtypeStruct((N, d_out), x_nchw.dtype),
        grid=(1,),
        in_specs=[
            pl.BlockSpec((4, N, d_in), lambda i: (0, 0, 0)),
            pl.BlockSpec((d_in, d_hidden), lambda i: (0, 0)),
            pl.BlockSpec((1, d_hidden), lambda i: (0, 0)),
            pl.BlockSpec((d_hidden, d_hidden), lambda i: (0, 0)),
            pl.BlockSpec((1, d_hidden), lambda i: (0, 0)),
            pl.BlockSpec((d_hidden, d_out), lambda i: (0, 0)),
            pl.BlockSpec((1, d_out), lambda i: (0, 0)),
        ],
        out_specs=pl.BlockSpec((N, d_out), lambda i: (0, 0)),
        compiler_params=pltpu.CompilerParams(
            dimension_semantics=("arbitrary",),
        ),
    )(
        x4,
        w1, b1.reshape(1, d_hidden),
        w2, b2.reshape(1, d_hidden),
        w3, b3.reshape(1, d_out),
    )


def init_params(key, d_in, d_hidden, d_out):
    ks = jax.random.split(key, 6)
    scale1 = 1.0 / jnp.sqrt(d_in)
    scale2 = 1.0 / jnp.sqrt(d_hidden)
    w1 = jax.random.normal(ks[0], (d_in, d_hidden), jnp.float32) * scale1
    b1 = jax.random.normal(ks[1], (d_hidden,), jnp.float32) * 0.01
    w2 = jax.random.normal(ks[2], (d_hidden, d_hidden), jnp.float32) * scale2
    b2 = jax.random.normal(ks[3], (d_hidden,), jnp.float32) * 0.01
    w3 = jax.random.normal(ks[4], (d_hidden, d_out), jnp.float32) * scale2
    b3 = jax.random.normal(ks[5], (d_out,), jnp.float32) * 0.01
    return ((w1, b1), (w2, b2), (w3, b3))


if __name__ == "__main__":
    # Scaled-down VGG16 tail: input (N, C, 14, 14) -> maxpool -> (N, C, 7, 7)
    # -> adaptive avgpool (identity) -> flatten (C*49) -> MLP.
    N, C, H, W = 2, 32, 14, 14
    D_IN = C * 7 * 7            # 1568
    D_HIDDEN = 256
    NUM_CLASSES = 16

    key = jax.random.PRNGKey(0)
    kx, kp = jax.random.split(key)
    x = jax.random.normal(kx, (N, C, H, W), jnp.float32)
    params = init_params(kp, D_IN, D_HIDDEN, NUM_CLASSES)

    out = second_model_forward(x, params)
    out = jax.block_until_ready(out)
    assert out.shape == (N, NUM_CLASSES)
    print("KERNEL_OK")
</pallas_src>

<mosaic_0001>
module attributes {stable_mosaic.version = 11 : i64} {
  func.func @_fused_tail_kernel(%arg0: i32, %arg1: memref<4x2x1568xf32, #tpu.memory_space<vmem>>, %arg2: memref<1568x256xf32, #tpu.memory_space<vmem>>, %arg3: memref<1x256xf32, #tpu.memory_space<vmem>>, %arg4: memref<256x256xf32, #tpu.memory_space<vmem>>, %arg5: memref<1x256xf32, #tpu.memory_space<vmem>>, %arg6: memref<256x16xf32, #tpu.memory_space<vmem>>, %arg7: memref<1x16xf32, #tpu.memory_space<vmem>>, %arg8: memref<2x16xf32, #tpu.memory_space<vmem>>) attributes {dimension_semantics = [#tpu.dimension_semantics<arbitrary>], iteration_bounds = array<i64: 1>, scalar_prefetch = 0 : i64, scratch_operands = 0 : i64, tpu.core_type = #tpu.core_type<tc>, window_params = [{pipeline_mode = #tpu.pipeline_mode<synchronous>, transform_indices = @transform_0, window_bounds = array<i64: 4, 2, 1568>}, {pipeline_mode = #tpu.pipeline_mode<synchronous>, transform_indices = @transform_1, window_bounds = array<i64: 1568, 256>}, {pipeline_mode = #tpu.pipeline_mode<synchronous>, transform_indices = @transform_2, window_bounds = array<i64: 1, 256>}, {pipeline_mode = #tpu.pipeline_mode<synchronous>, transform_indices = @transform_3, window_bounds = array<i64: 256, 256>}, {pipeline_mode = #tpu.pipeline_mode<synchronous>, transform_indices = @transform_4, window_bounds = array<i64: 1, 256>}, {pipeline_mode = #tpu.pipeline_mode<synchronous>, transform_indices = @transform_5, window_bounds = array<i64: 256, 16>}, {pipeline_mode = #tpu.pipeline_mode<synchronous>, transform_indices = @transform_6, window_bounds = array<i64: 1, 16>}, {pipeline_mode = #tpu.pipeline_mode<synchronous>, transform_indices = @transform_7, window_bounds = array<i64: 2, 16>}]} {
    %c0 = arith.constant 0 : index
    %c0_0 = arith.constant 0 : index
    %c0_1 = arith.constant 0 : index
    %0 = vector.load %arg1[%c0, %c0_0, %c0_1] : memref<4x2x1568xf32, #tpu.memory_space<vmem>>, vector<1x2x1568xf32>
    %1 = vector.shape_cast %0 : vector<1x2x1568xf32> to vector<2x1568xf32>
    %c1 = arith.constant 1 : index
    %c0_2 = arith.constant 0 : index
    %c0_3 = arith.constant 0 : index
    %2 = vector.load %arg1[%c1, %c0_2, %c0_3] : memref<4x2x1568xf32, #tpu.memory_space<vmem>>, vector<1x2x1568xf32>
    %3 = vector.shape_cast %2 : vector<1x2x1568xf32> to vector<2x1568xf32>
    %4 = arith.maximumf %1, %3 : vector<2x1568xf32>
    %c2 = arith.constant 2 : index
    %c0_4 = arith.constant 0 : index
    %c0_5 = arith.constant 0 : index
    %5 = vector.load %arg1[%c2, %c0_4, %c0_5] : memref<4x2x1568xf32, #tpu.memory_space<vmem>>, vector<1x2x1568xf32>
    %6 = vector.shape_cast %5 : vector<1x2x1568xf32> to vector<2x1568xf32>
    %c3 = arith.constant 3 : index
    %c0_6 = arith.constant 0 : index
    %c0_7 = arith.constant 0 : index
    %7 = vector.load %arg1[%c3, %c0_6, %c0_7] : memref<4x2x1568xf32, #tpu.memory_space<vmem>>, vector<1x2x1568xf32>
    %8 = vector.shape_cast %7 : vector<1x2x1568xf32> to vector<2x1568xf32>
    %9 = arith.maximumf %6, %8 : vector<2x1568xf32>
    %10 = arith.maximumf %4, %9 : vector<2x1568xf32>
    %c0_8 = arith.constant 0 : index
    %c0_9 = arith.constant 0 : index
    %11 = vector.load %arg2[%c0_8, %c0_9] : memref<1568x256xf32, #tpu.memory_space<vmem>>, vector<1568x256xf32>
    %cst = arith.constant dense<0.000000e+00> : vector<2x256xf32>
    %12 = tpu.matmul %10, %11, %cst {dimension_numbers = #tpu.dot_dimension_numbers<[1], [0], [0], [1], [0, 0, 1, 1], [], []>} : vector<2x1568xf32>, vector<1568x256xf32>, vector<2x256xf32> -> vector<2x256xf32>
    %c0_10 = arith.constant 0 : index
    %c0_11 = arith.constant 0 : index
    %13 = vector.load %arg3[%c0_10, %c0_11] : memref<1x256xf32, #tpu.memory_space<vmem>>, vector<1x256xf32>
    %14 = vector.broadcast %13 : vector<1x256xf32> to vector<2x256xf32>
    %15 = arith.addf %12, %14 : vector<2x256xf32>
    %cst_12 = arith.constant 0.000000e+00 : f32
    %16 = vector.broadcast %cst_12 : f32 to vector<2x256xf32>
    %17 = arith.maximumf %15, %16 : vector<2x256xf32>
    %c0_13 = arith.constant 0 : index
    %c0_14 = arith.constant 0 : index
    %18 = vector.load %arg4[%c0_13, %c0_14] : memref<256x256xf32, #tpu.memory_space<vmem>>, vector<256x256xf32>
    %cst_15 = arith.constant dense<0.000000e+00> : vector<2x256xf32>
    %19 = tpu.matmul %17, %18, %cst_15 {dimension_numbers = #tpu.dot_dimension_numbers<[1], [0], [0], [1], [0, 0, 1, 1], [], []>} : vector<2x256xf32>, vector<256x256xf32>, vector<2x256xf32> -> vector<2x256xf32>
    %c0_16 = arith.constant 0 : index
    %c0_17 = arith.constant 0 : index
    %20 = vector.load %arg5[%c0_16, %c0_17] : memref<1x256xf32, #tpu.memory_space<vmem>>, vector<1x256xf32>
    %21 = vector.broadcast %20 : vector<1x256xf32> to vector<2x256xf32>
    %22 = arith.addf %19, %21 : vector<2x256xf32>
    %cst_18 = arith.constant 0.000000e+00 : f32
    %23 = vector.broadcast %cst_18 : f32 to vector<2x256xf32>
    %24 = arith.maximumf %22, %23 : vector<2x256xf32>
    %c0_19 = arith.constant 0 : index
    %c0_20 = arith.constant 0 : index
    %25 = vector.load %arg6[%c0_19, %c0_20] : memref<256x16xf32, #tpu.memory_space<vmem>>, vector<256x16xf32>
    %cst_21 = arith.constant dense<0.000000e+00> : vector<2x16xf32>
    %26 = tpu.matmul %24, %25, %cst_21 {dimension_numbers = #tpu.dot_dimension_numbers<[1], [0], [0], [1], [0, 0, 1, 1], [], []>} : vector<2x256xf32>, vector<256x16xf32>, vector<2x16xf32> -> vector<2x16xf32>
    %c0_22 = arith.constant 0 : index
    %c0_23 = arith.constant 0 : index
    %27 = vector.load %arg7[%c0_22, %c0_23] : memref<1x16xf32, #tpu.memory_space<vmem>>, vector<1x16xf32>
    %28 = vector.broadcast %27 : vector<1x16xf32> to vector<2x16xf32>
    %29 = arith.addf %26, %28 : vector<2x16xf32>
    %c0_24 = arith.constant 0 : index
    %c0_25 = arith.constant 0 : index
    %30 = vector.load %arg8[%c0_24, %c0_25] : memref<2x16xf32, #tpu.memory_space<vmem>>, vector<2x16xf32>
    tpu.vector_store %arg8[%c0_24, %c0_25], %29 {strides = array<i32>} : memref<2x16xf32, #tpu.memory_space<vmem>>, vector<2x16xf32>,
    return
  }
  func.func @transform_0(%arg0: i32) -> (i32, i32, i32) {
    %c0_i32 = arith.constant 0 : i32
    %c0_i32_0 = arith.constant 0 : i32
    %c0_i32_1 = arith.constant 0 : i32
    %c0_i32_2 = arith.constant 0 : i32
    return %c0_i32, %c0_i32_0, %c0_i32_1 : i32, i32, i32
  }
  func.func @transform_1(%arg0: i32) -> (i32, i32) {
    %c0_i32 = arith.constant 0 : i32
    %c0_i32_0 = arith.constant 0 : i32
    %c0_i32_1 = arith.constant 0 : i32
    return %c0_i32, %c0_i32_0 : i32, i32
  }
  func.func @transform_2(%arg0: i32) -> (i32, i32) {
    %c0_i32 = arith.constant 0 : i32
    %c0_i32_0 = arith.constant 0 : i32
    %c0_i32_1 = arith.constant 0 : i32
    return %c0_i32, %c0_i32_0 : i32, i32
  }
  func.func @transform_3(%arg0: i32) -> (i32, i32) {
    %c0_i32 = arith.constant 0 : i32
    %c0_i32_0 = arith.constant 0 : i32
    %c0_i32_1 = arith.constant 0 : i32
    return %c0_i32, %c0_i32_0 : i32, i32
  }
  func.func @transform_4(%arg0: i32) -> (i32, i32) {
    %c0_i32 = arith.constant 0 : i32
    %c0_i32_0 = arith.constant 0 : i32
    %c0_i32_1 = arith.constant 0 : i32
    return %c0_i32, %c0_i32_0 : i32, i32
  }
  func.func @transform_5(%arg0: i32) -> (i32, i32) {
    %c0_i32 = arith.constant 0 : i32
    %c0_i32_0 = arith.constant 0 : i32
    %c0_i32_1 = arith.constant 0 : i32
    return %c0_i32, %c0_i32_0 : i32, i32
  }
  func.func @transform_6(%arg0: i32) -> (i32, i32) {
    %c0_i32 = arith.constant 0 : i32
    %c0_i32_0 = arith.constant 0 : i32
    %c0_i32_1 = arith.constant 0 : i32
    return %c0_i32, %c0_i32_0 : i32, i32
  }
  func.func @transform_7(%arg0: i32) -> (i32, i32) {
    %c0_i32 = arith.constant 0 : i32
    %c0_i32_0 = arith.constant 0 : i32
    %c0_i32_1 = arith.constant 0 : i32
    return %c0_i32, %c0_i32_0 : i32, i32
  }
}

</mosaic_0001>

<bundles_post_ra>
// kernel: tpu_custom_call.1
= control target key start
LH: loop header
LB: loop body
LE: loop exit
PB: predicated region body
PF: predicated region fallthrough
CT: control target
= control target key end

     0   :  { %12 = vsyncpa [#allocation3], 0  ;;  %s1776_s0 = inlined_call_operand.hbm [shape: f32[4,2,1568], index: 0, kind: input, shape index: {}]   ;;  %s1777_s1 = inlined_call_operand.hbm [shape: f32[1568,256], index: 1, kind: input, shape index: {}]   ;;  %s1778_s2 = inlined_call_operand.hbm [shape: f32[1,256], index: 2, kind: input, shape index: {}]   ;;  %s1779_s3 = inlined_call_operand.hbm [shape: f32[256,256], index: 3, kind: input, shape index: {}]   ;;  %s1780_s4 = inlined_call_operand.hbm [shape: f32[1,256], index: 4, kind: input, shape index: {}]   ;;  %s1781_s5 = inlined_call_operand.vmem [shape: f32[256,16], index: 5, kind: input, shape index: {}]   ;;  %s1782_s6 = inlined_call_operand.hbm [shape: f32[1,16], index: 6, kind: input, shape index: {}]   ;;  %s1783_s7 = inlined_call_operand.hbm [shape: f32[2,16], index: 7, kind: output, shape index: {}]  }
   0x1   :  { %13 = vsyncpa [#allocation6], 0 }
   0x2   :  { %14 = vsyncpa [#allocation9], 0 }
   0x3   :  { %15 = vsyncpa [#allocation12], 0 }
   0x4   :  { %16 = vsyncpa [#allocation4], 0  ;;  %s1592_s24 = smov [#allocation5]  }
   0x5   :  { %s34_s25 = sshll.u32 %s1592_s24, 4  ;;  %s35_s25 = int_to_ptr.vmem [resolvable:$true] %s34_s25 }
   0x6   :  { %s1450_s26 = scalar_lea.vmem %s35_s25, 50176  ;;  %p1455_p1 = scmp.lt.s32.totalorder %s35_s25, %s35_s25 }
   0x7   :  { %p1451_p0 = scmp.ne.s32.totalorder %s35_s25, %s1450_s26  ;;  %p1456_p2 = scmp.lt.s32.totalorder %s1450_s26, %s1450_s26 }
   0x9   :  { %p1457_p3 = por %p1456_p2, %p1455_p1 }
   0xb   :  { %p1458_p4 = pnand %p1457_p3, %p1451_p0 }
   0xd   :  { %1461 = shalt.err (!%p1458_p4)
}
   0xe   :  { %s1593_s27 = smov 256   ;;  %s1594_s28 = smov 16  }
   0xf   :  { %40 = dma.hbm_to_vmem [thread:$0]  %s1777_s1, 50176, %s35_s25, [#allocation6], %s1593_s27, %s1593_s27, %s1594_s28  }
  0x10   :  { %s1595_s8 = smov [#allocation8]   ;;  %s1596_s10 = smov [#allocation2]  }
  0x11   :  { %s56_s9 = sshll.u32 %s1595_s8, 4  ;;  %s22_s11 = sshll.u32 %s1596_s10, 4  ;;  %s57_s9 = int_to_ptr.vmem [resolvable:$true] %s56_s9  ;;  %s23_s11 = int_to_ptr.vmem [resolvable:$true] %s22_s11 }
  0x12   :  { %s1470_s12 = scalar_lea.vmem %s57_s9, 8192  ;;  %p1475_p6 = scmp.lt.s32.totalorder %s57_s9, %s57_s9 }
  0x13   :  { %p1471_p5 = scmp.ne.s32.totalorder %s57_s9, %s1470_s12  ;;  %p1476_p7 = scmp.lt.s32.totalorder %s1470_s12, %s1470_s12 }
  0x15   :  { %p1477_p8 = por %p1476_p7, %p1475_p6 }
  0x17   :  { %p1478_p9 = pnand %p1477_p8, %p1471_p5 }
  0x19   :  { %1481 = shalt.err (!%p1478_p9)
}
  0x1a   :  { %62 = dma.hbm_to_vmem [thread:$0]  %s1779_s3, 8192, %s57_s9, [#allocation9], %s1593_s27, %s1593_s27, %s1594_s28  }
  0x1b   :  { %s1490_s15 = scalar_lea.vmem %s23_s11, 1664  ;;  %p1495_p11 = scmp.lt.s32.totalorder %s23_s11, %s23_s11 }
  0x1c   :  { %p1491_p10 = scmp.ne.s32.totalorder %s23_s11, %s1490_s15  ;;  %p1496_p12 = scmp.lt.s32.totalorder %s1490_s15, %s1490_s15 }
  0x1e   :  { %p1497_p13 = por %p1496_p12, %p1495_p11 }
  0x20   :  { %p1498_p0 = pnand %p1497_p13, %p1491_p10 }
  0x22   :  { %1501 = shalt.err (!%p1498_p0)
}
  0x23   :  { %s1597_s1 = smov 416   ;;  %s1598_s16 = smov 26  }
  0x24   :  { %28 = dma.hbm_to_vmem [thread:$0]  %s1776_s0, 1664, %s23_s11, [#allocation3], %s1597_s1, %s1597_s1, %s1598_s16  }
  0x25   :  { %s1599_s19 = smov [#allocation7]   ;;  %s1600_s21 = smov [#allocation10]  }
  0x26   :  { %s47_s20 = sshll.u32 %s1599_s19, 4  ;;  %s69_s22 = sshll.u32 %s1600_s21, 4  ;;  %s48_s20 = int_to_ptr.vmem [resolvable:$true] %s47_s20  ;;  %s70_s22 = int_to_ptr.vmem [resolvable:$true] %s69_s22 }
  0x27   :  { %s1510_s3 = scalar_lea.vmem %s48_s20, 32  ;;  %p1515_p2 = scmp.lt.s32.totalorder %s48_s20, %s48_s20 }
  0x28   :  { %p1511_p1 = scmp.ne.s32.totalorder %s48_s20, %s1510_s3  ;;  %p1516_p3 = scmp.lt.s32.totalorder %s1510_s3, %s1510_s3 }
  0x2a   :  { %p1517_p4 = por %p1516_p3, %p1515_p2 }
  0x2c   :  { %p1518_p5 = pnand %p1517_p4, %p1511_p1 }
  0x2e   :  { %1521 = shalt.err (!%p1518_p5)
}
  0x2f   :  { %50 = dma.hbm_to_vmem [thread:$0]  %s1778_s2, 32, %s48_s20, [#allocation6]  }
  0x30   :  { %s1530_s25 = scalar_lea.vmem %s70_s22, 32  ;;  %p1535_p7 = scmp.lt.s32.totalorder %s70_s22, %s70_s22 }
  0x31   :  { %p1531_p6 = scmp.ne.s32.totalorder %s70_s22, %s1530_s25  ;;  %p1536_p8 = scmp.lt.s32.totalorder %s1530_s25, %s1530_s25 }
  0x33   :  { %p1537_p9 = por %p1536_p8, %p1535_p7 }
  0x35   :  { %p1538_p10 = pnand %p1537_p9, %p1531_p6 }
  0x37   :  { %1541 = shalt.err (!%p1538_p10)
}
  0x38   :  { %72 = dma.hbm_to_vmem [thread:$0]  %s1780_s4, 32, %s70_s22, [#allocation9]  }
  0x39   :  { %s1601_s27 = smov [#allocation11]  }
  0x3a   :  { %s81_s28 = sshll.u32 %s1601_s27, 4  ;;  %s82_s28 = int_to_ptr.vmem [resolvable:$true] %s81_s28 }
  0x3b   :  { %s1550_s29 = scalar_lea.vmem %s82_s28, 16  ;;  %s1554_s30 = scalar_lea.vmem %s82_s28, 32 }
  0x3c   :  { %p1551_p11 = scmp.ne.s32.totalorder %s82_s28, %s1550_s29  ;;  %p1555_p12 = scmp.lt.s32.totalorder %s82_s28, %s82_s28 }
  0x3d   :  { %p1556_p13 = scmp.lt.s32.totalorder %s1554_s30, %s1550_s29 }
  0x3f   :  { %p1557_p0 = por %p1556_p13, %p1555_p12 }
  0x41   :  { %p1558_p1 = pnand %p1557_p0, %p1551_p11 }
  0x43   :  { %1561 = shalt.err (!%p1558_p1)
}
  0x44   :  { %84 = dma.hbm_to_vmem [thread:$0]  %s1782_s6, 16, %s82_s28, [#allocation12]  }
  0x45   :  { %1582 = dma.done.wait [#allocation3], 1664  }
  0x46   :  { %1583 = vsyncadd [#allocation3], 4294965632 }
  0x47   :  { %1584 = dma.done.wait [#allocation6], 50208  }
  0x48   :  { %1585 = vsyncadd [#allocation6], 4294917088 }
  0x49   :  { %1586 = dma.done.wait [#allocation9], 8224  }
  0x4a   :  { %1587 = vsyncadd [#allocation9], 4294959072 }
  0x4b   :  { %1588 = dma.done.wait [#allocation12], 16  }
  0x4c   :  { %1589 = vsyncadd [#allocation12], 4294967280  ;;  %v165_v0 = vld [vmem:[#allocation5 + $0xf8] sm:$0xff]  ;;  %v164_v1 = vld [vmem:[#allocation5 + $0xf0] sm:$0xff]  ;;  %vm612_vm0 = vcmask 261120   ;;  %s1604_s13 = smov [#allocation13]  }
  0x4d   :  { %v163_v2 = vld [vmem:[#allocation5 + $0xe8] sm:$0xff]  ;;  %615 = vmatprep.subr.mxu0 %v165_v0  ;;  %v229_v3 = vld [vmem:[#allocation5 + $0x2f8] sm:$0xff]  ;;  %v162_v4 = vld [vmem:[#allocation5 + $0xe0] sm:$0xff]  ;;  %s1380_s14 = sshll.u32 %s1604_s13, 4  ;;  %vm1372_vm1 = vcmask 123904   ;;  %s1381_s14 = int_to_ptr.vmem [resolvable:$true] %s1380_s14 }
  0x4e   :  { %v228_v5 = vld [vmem:[#allocation5 + $0x2f0] sm:$0xff]  ;;  %616 = vmatpush1.msra.mxu0 %v164_v1  ;;  %686 = vmatprep.subr.mxu1 %v229_v3  ;;  %v161_v6 = vld [vmem:[#allocation5 + $0xd8] sm:$0xff]  ;;  %v227_v7 = vld [vmem:[#allocation5 + $0x2e8] sm:$0xff]  ;;  %p1567_p3 = scmp.lt.s32.totalorder %s1381_s14, %s1381_s14 }
  0x4f   :  { %617 = vmatprep.subr.mxu0 %v163_v2  ;;  %687 = vmatpush1.msra.mxu1 %v228_v5  ;;  %v160_v8 = vld [vmem:[#allocation5 + $0xd0] sm:$0xff]  ;;  %v226_v9 = vld [vmem:[#allocation5 + $0x2e0] sm:$0xff]  ;;  %v225_v10 = vld [vmem:[#allocation5 + $0x2d8] sm:$0xff] }
  0x50   :  { %618 = vmatpush1.msra.mxu0 %v162_v4  ;;  %688 = vmatprep.subr.mxu1 %v227_v7  ;;  %v159_v11 = vld [vmem:[#allocation5 + $0xc8] sm:$0xff]  ;;  %v224_v12 = vld [vmem:[#allocation5 + $0x2d0] sm:$0xff]  ;;  %v158_v13 = vld [vmem:[#allocation5 + $0xc0] sm:$0xff] }
  0x51   :  { %619 = vmatprep.subr.mxu0 %v161_v6  ;;  %689 = vmatpush1.msra.mxu1 %v226_v9  ;;  %v223_v14 = vld [vmem:[#allocation5 + $0x2c8] sm:$0xff]  ;;  %v157_v15 = vld [vmem:[#allocation5 + $0xb8] sm:$0xff]  ;;  %v222_v16 = vld [vmem:[#allocation5 + $0x2c0] sm:$0xff] }
  0x52   :  { %620 = vmatpush1.msra.mxu0 %v160_v8  ;;  %690 = vmatprep.subr.mxu1 %v225_v10  ;;  %v156_v17 = vld [vmem:[#allocation5 + $0xb0] sm:$0xff]  ;;  %v221_v18 = vld [vmem:[#allocation5 + $0x2b8] sm:$0xff]  ;;  %v155_v19 = vld [vmem:[#allocation5 + $0xa8] sm:$0xff] }
  0x53   :  { %621 = vmatprep.subr.mxu0 %v159_v11  ;;  %691 = vmatpush1.msra.mxu1 %v224_v12  ;;  %v220_v20 = vld [vmem:[#allocation5 + $0x2b0] sm:$0xff]  ;;  %v154_v21 = vld [vmem:[#allocation5 + $0xa0] sm:$0xff]  ;;  %v219_v22 = vld [vmem:[#allocation5 + $0x2a8] sm:$0xff] }
  0x54   :  { %622 = vmatpush1.msra.mxu0 %v158_v13  ;;  %692 = vmatprep.subr.mxu1 %v223_v14  ;;  %v153_v23 = vld [vmem:[#allocation5 + $0x98] sm:$0xff]  ;;  %v218_v24 = vld [vmem:[#allocation5 + $0x2a0] sm:$0xff]  ;;  %v152_v25 = vld [vmem:[#allocation5 + $0x90] sm:$0xff] }
  0x55   :  { %623 = vmatprep.subr.mxu0 %v157_v15  ;;  %693 = vmatpush1.msra.mxu1 %v222_v16  ;;  %v217_v26 = vld [vmem:[#allocation5 + $0x298] sm:$0xff]  ;;  %v151_v27 = vld [vmem:[#allocation5 + $0x88] sm:$0xff]  ;;  %v216_v28 = vld [vmem:[#allocation5 + $0x290] sm:$0xff] }
  0x56   :  { %624 = vmatpush1.msra.mxu0 %v156_v17  ;;  %694 = vmatprep.subr.mxu1 %v221_v18  ;;  %v150_v29 = vld [vmem:[#allocation5 + $0x80] sm:$0xff]  ;;  %v215_v30 = vld [vmem:[#allocation5 + $0x288] sm:$0xff]  ;;  %v149_v31 = vld [vmem:[#allocation5 + $0x78] sm:$0xff] }
  0x57   :  { %625 = vmatprep.subr.mxu0 %v155_v19  ;;  %695 = vmatpush1.msra.mxu1 %v220_v20  ;;  %v214_v32 = vld [vmem:[#allocation5 + $0x280] sm:$0xff]  ;;  %v148_v33 = vld [vmem:[#allocation5 + $0x70] sm:$0xff]  ;;  %v213_v34 = vld [vmem:[#allocation5 + $0x278] sm:$0xff] }
  0x58   :  { %626 = vmatpush1.msra.mxu0 %v154_v21  ;;  %696 = vmatprep.subr.mxu1 %v219_v22  ;;  %v147_v35 = vld [vmem:[#allocation5 + $0x68] sm:$0xff]  ;;  %v212_v36 = vld [vmem:[#allocation5 + $0x270] sm:$0xff]  ;;  %v146_v37 = vld [vmem:[#allocation5 + $0x60] sm:$0xff] }
  0x59   :  { %627 = vmatprep.subr.mxu0 %v153_v23  ;;  %697 = vmatpush1.msra.mxu1 %v218_v24  ;;  %v211_v38 = vld [vmem:[#allocation5 + $0x268] sm:$0xff]  ;;  %v145_v39 = vld [vmem:[#allocation5 + $0x58] sm:$0xff]  ;;  %v210_v40 = vld [vmem:[#allocation5 + $0x260] sm:$0xff] }
  0x5a   :  { %628 = vmatpush1.msra.mxu0 %v152_v25  ;;  %698 = vmatprep.subr.mxu1 %v217_v26  ;;  %v144_v41 = vld [vmem:[#allocation5 + $0x50] sm:$0xff]  ;;  %v209_v42 = vld [vmem:[#allocation5 + $0x258] sm:$0xff]  ;;  %v143_v43 = vld [vmem:[#allocation5 + $0x48] sm:$0xff] }
  0x5b   :  { %629 = vmatprep.subr.mxu0 %v151_v27  ;;  %699 = vmatpush1.msra.mxu1 %v216_v28  ;;  %v208_v44 = vld [vmem:[#allocation5 + $0x250] sm:$0xff]  ;;  %v142_v45 = vld [vmem:[#allocation5 + $0x40] sm:$0xff]  ;;  %v207_v46 = vld [vmem:[#allocation5 + $0x248] sm:$0xff] }
  0x5c   :  { %630 = vmatpush1.msra.mxu0 %v150_v29  ;;  %700 = vmatprep.subr.mxu1 %v215_v30  ;;  %v141_v47 = vld [vmem:[#allocation5 + $0x38] sm:$0xff]  ;;  %v206_v48 = vld [vmem:[#allocation5 + $0x240] sm:$0xff]  ;;  %v140_v49 = vld [vmem:[#allocation5 + $0x30] sm:$0xff]  ;;  %v528_v30 = vlaneseq }
  0x5d   :  { %631 = vmatprep.subr.mxu0 %v149_v31  ;;  %701 = vmatpush1.msra.mxu1 %v214_v32  ;;  %v205_v50 = vld [vmem:[#allocation5 + $0x238] sm:$0xff]  ;;  %v139_v51 = vld [vmem:[#allocation5 + $0x28] sm:$0xff]  ;;  %v204_v52 = vld [vmem:[#allocation5 + $0x230] sm:$0xff]  ;;  %v1602_v31 = vmov 1983009808  }
  0x5e   :  { %632 = vmatpush1.msra.mxu0 %v148_v33  ;;  %702 = vmatprep.subr.mxu1 %v213_v34  ;;  %v138_v53 = vld [vmem:[#allocation5 + $0x20] sm:$0xff]  ;;  %v203_v54 = vld [vmem:[#allocation5 + $0x228] sm:$0xff]  ;;  %v137_v55 = vld [vmem:[#allocation5 + $0x18] sm:$0xff]  ;;  %v544_v32 = vunpack.c.l.s4 %v1602_v31 }
  0x5f   :  { %633 = vmatprep.subr.mxu0 %v147_v35  ;;  %703 = vmatpush1.msra.mxu1 %v212_v36  ;;  %v202_v56 = vld [vmem:[#allocation5 + $0x220] sm:$0xff]  ;;  %v136_v57 = vld [vmem:[#allocation5 + $0x10] sm:$0xff]  ;;  %v201_v58 = vld [vmem:[#allocation5 + $0x218] sm:$0xff] }
  0x60   :  { %634 = vmatpush1.msra.mxu0 %v146_v37  ;;  %704 = vmatprep.subr.mxu1 %v211_v38  ;;  %v135_v59 = vld [vmem:[#allocation5 + $0x8] sm:$0xff]  ;;  %v200_v60 = vld [vmem:[#allocation5 + $0x210] sm:$0xff]  ;;  %v134_v61 = vld [vmem:[#allocation5] sm:$0xff] }
  0x61   :  { %635 = vmatprep.subr.mxu0 %v145_v39  ;;  %705 = vmatpush1.msra.mxu1 %v210_v40  ;;  %v199_v62 = vld [vmem:[#allocation5 + $0x208] sm:$0xff]  ;;  %v197_v63 = vld [vmem:[#allocation5 + $0x1f8] sm:$0xff]  ;;  %v198_v0 = vld [vmem:[#allocation5 + $0x200] sm:$0xff] }
  0x62   :  { %636 = vmatpush1.msra.mxu0 %v144_v41  ;;  %706 = vmatprep.subr.mxu1 %v209_v42  ;;  %v196_v1 = vld [vmem:[#allocation5 + $0x1f0] sm:$0xff]  ;;  %v261_v2 = vld [vmem:[#allocation5 + $0x3f8] sm:$0xff]  ;;  %v195_v3 = vld [vmem:[#allocation5 + $0x1e8] sm:$0xff] }
  0x63   :  { %637 = vmatprep.subr.mxu0 %v143_v43  ;;  %707 = vmatpush1.msra.mxu1 %v208_v44  ;;  %v260_v4 = vld [vmem:[#allocation5 + $0x3f0] sm:$0xff]  ;;  %v194_v5 = vld [vmem:[#allocation5 + $0x1e0] sm:$0xff]  ;;  %v259_v6 = vld [vmem:[#allocation5 + $0x3e8] sm:$0xff]  ;;  %v1663_v44 = vshrl.u32 %v528_v30, 7 }
  0x64   :  { %638 = vmatpush1.msra.mxu0 %v142_v45  ;;  %708 = vmatprep.subr.mxu1 %v207_v46  ;;  %v193_v7 = vld [vmem:[#allocation5 + $0x1d8] sm:$0xff]  ;;  %v258_v8 = vld [vmem:[#allocation5 + $0x3e0] sm:$0xff]  ;;  %v192_v9 = vld [vmem:[#allocation5 + $0x1d0] sm:$0xff]  ;;  %v545_v45 = vunpack.c.0.s8 %v544_v32 }
  0x65   :  { %639 = vmatprep.subr.mxu0 %v141_v47  ;;  %709 = vmatpush1.msra.mxu1 %v206_v48  ;;  %v257_v10 = vld [vmem:[#allocation5 + $0x3d8] sm:$0xff]  ;;  %v191_v11 = vld [vmem:[#allocation5 + $0x1c8] sm:$0xff]  ;;  %v256_v12 = vld [vmem:[#allocation5 + $0x3d0] sm:$0xff] }
  0x66   :  { %640 = vmatpush1.msra.mxu0 %v140_v49  ;;  %710 = vmatprep.subr.mxu1 %v205_v50  ;;  %v190_v13 = vld [vmem:[#allocation5 + $0x1c0] sm:$0xff]  ;;  %v255_v14 = vld [vmem:[#allocation5 + $0x3c8] sm:$0xff]  ;;  %v189_v15 = vld [vmem:[#allocation5 + $0x1b8] sm:$0xff] }
  0x67   :  { %641 = vmatprep.subr.mxu0 %v139_v51  ;;  %711 = vmatpush1.msra.mxu1 %v204_v52  ;;  %v254_v16 = vld [vmem:[#allocation5 + $0x3c0] sm:$0xff]  ;;  %v188_v17 = vld [vmem:[#allocation5 + $0x1b0] sm:$0xff]  ;;  %v253_v18 = vld [vmem:[#allocation5 + $0x3b8] sm:$0xff] }
  0x68   :  { %642 = vmatpush1.msra.mxu0 %v138_v53  ;;  %712 = vmatprep.subr.mxu1 %v203_v54  ;;  %v187_v19 = vld [vmem:[#allocation5 + $0x1a8] sm:$0xff]  ;;  %v252_v20 = vld [vmem:[#allocation5 + $0x3b0] sm:$0xff]  ;;  %v186_v21 = vld [vmem:[#allocation5 + $0x1a0] sm:$0xff] }
  0x69   :  { %643 = vmatprep.subr.mxu0 %v137_v55  ;;  %713 = vmatpush1.msra.mxu1 %v202_v56  ;;  %v185_v22 = vld [vmem:[#allocation5 + $0x198] sm:$0xff]  ;;  %v251_v23 = vld [vmem:[#allocation5 + $0x3a8] sm:$0xff]  ;;  %v184_v24 = vld [vmem:[#allocation5 + $0x190] sm:$0xff]  ;;  %v1666_v55 = vsub.s32 %v545_v45, %v1663_v44 }
  0x6a   :  { %644 = vmatpush1.msra.mxu0 %v136_v57  ;;  %714 = vmatprep.subr.mxu1 %v201_v58  ;;  %v250_v25 = vld [vmem:[#allocation5 + $0x3a0] sm:$0xff]  ;;  %v183_v26 = vld [vmem:[#allocation5 + $0x188] sm:$0xff]  ;;  %v249_v27 = vld [vmem:[#allocation5 + $0x398] sm:$0xff] }
  0x6b   :  { %645 = vmatprep.subr.mxu0 %v135_v59  ;;  %715 = vmatpush1.msra.mxu1 %v200_v60  ;;  %v248_v28 = vld [vmem:[#allocation5 + $0x390] sm:$0xff]  ;;  %v103_v29 = vld [vmem:[#allocation2] sm:$0xff]  ;;  %v122_v35 = vld [vmem:[#allocation2 + $0x4e] sm:$0xff] }
  0x6c   :  { %646 = vmatpush1.msra.mxu0 %v134_v61  ;;  %716 = vmatprep.subr.mxu1 %v199_v62  ;;  %v108_v33 = vld [vmem:[#allocation2 + $0x1a] sm:$0xff]  ;;  %v182_v36 = vld [vmem:[#allocation5 + $0x180] sm:$0xff]  ;;  %v247_v37 = vld [vmem:[#allocation5 + $0x388] sm:$0xff] }
  0x6d   :  { %647 = vmatprep.subr.mxu0 %v197_v63  ;;  %717 = vmatpush1.msra.mxu1 %v198_v0  ;;  %v117_v34 = vld [vmem:[#allocation2 + $0x34] sm:$0xff]  ;;  %v181_v38 = vld [vmem:[#allocation5 + $0x178] sm:$0xff]  ;;  %v246_v39 = vld [vmem:[#allocation5 + $0x380] sm:$0xff]  ;;  %v112_v42 = vmax.f32 %v103_v29, %v108_v33 }
  0x6e   :  { %648 = vmatpush2.msra.mxu0 %v196_v1  ;;  %718 = vmatprep.subr.mxu1 %v261_v2  ;;  %v180_v40 = vld [vmem:[#allocation5 + $0x170] sm:$0xff]  ;;  %v245_v41 = vld [vmem:[#allocation5 + $0x378] sm:$0xff]  ;;  %v126_v43 = vmax.f32 %v117_v34, %v122_v35  ;;  %v179_v46 = vld [vmem:[#allocation5 + $0x168] sm:$0xff] }
  0x6f   :  { %649 = vmatprep.subr.mxu0 %v195_v3  ;;  %719 = vmatpush2.msra.mxu1 %v260_v4  ;;  %v244_v47 = vld [vmem:[#allocation5 + $0x370] sm:$0xff]  ;;  %v178_v48 = vld [vmem:[#allocation5 + $0x160] sm:$0xff]  ;;  %v243_v49 = vld [vmem:[#allocation5 + $0x368] sm:$0xff] }
  0x70   :  { %650 = vmatpush2.msra.mxu0 %v194_v5  ;;  %720 = vmatprep.subr.mxu1 %v259_v6  ;;  %v177_v50 = vld [vmem:[#allocation5 + $0x158] sm:$0xff]  ;;  %v242_v51 = vld [vmem:[#allocation5 + $0x360] sm:$0xff]  ;;  %v176_v52 = vld [vmem:[#allocation5 + $0x150] sm:$0xff]  ;;  %v130_v54 = vmax.f32 %v112_v42, %v126_v43 }
  0x71   :  { %651 = vmatprep.subr.mxu0 %v193_v7  ;;  %721 = vmatpush2.msra.mxu1 %v258_v8  ;;  %v241_v53 = vld [vmem:[#allocation5 + $0x358] sm:$0xff]  ;;  %v175_v56 = vld [vmem:[#allocation5 + $0x148] sm:$0xff]  ;;  %v240_v57 = vld [vmem:[#allocation5 + $0x350] sm:$0xff] }
  0x72   :  { %652 = vmatpush2.msra.mxu0 %v192_v9  ;;  %722 = vmatprep.subr.mxu1 %v257_v10  ;;  %v174_v58 = vld [vmem:[#allocation5 + $0x140] sm:$0xff]  ;;  %v239_v59 = vld [vmem:[#allocation5 + $0x348] sm:$0xff]  ;;  %v173_v60 = vld [vmem:[#allocation5 + $0x138] sm:$0xff]  ;;  %v549_v0 = vrot.slane %v130_v54, %v1666_v55  ;;  %v542_v1 = vcombine.high %v130_v54, %v130_v54 }
  0x73   :  { %653 = vmatprep.subr.mxu0 %v191_v11  ;;  %723 = vmatpush2.msra.mxu1 %v256_v12  ;;  %v238_v61 = vld [vmem:[#allocation5 + $0x340] sm:$0xff]  ;;  %v172_v62 = vld [vmem:[#allocation5 + $0x130] sm:$0xff]  ;;  %v237_v63 = vld [vmem:[#allocation5 + $0x338] sm:$0xff] }
  0x74   :  { %654 = vmatpush2.msra.mxu0 %v190_v13  ;;  %724 = vmatprep.subr.mxu1 %v255_v14  ;;  %v171_v2 = vld [vmem:[#allocation5 + $0x128] sm:$0xff]  ;;  %v236_v3 = vld [vmem:[#allocation5 + $0x330] sm:$0xff]  ;;  %v170_v4 = vld [vmem:[#allocation5 + $0x120] sm:$0xff]  ;;  %v557_v10 = vcombine.high %v549_v0, %v549_v0  ;;  %v556_v11 = vrot.slane %v542_v1, %v1666_v55 }
  0x75   :  { %655 = vmatprep.subr.mxu0 %v189_v15  ;;  %725 = vmatpush2.msra.mxu1 %v254_v16  ;;  %v235_v5 = vld [vmem:[#allocation5 + $0x328] sm:$0xff]  ;;  %v169_v6 = vld [vmem:[#allocation5 + $0x118] sm:$0xff]  ;;  %v234_v7 = vld [vmem:[#allocation5 + $0x320] sm:$0xff] }
  0x76   :  { %656 = vmatpush2.msra.mxu0 %v188_v17  ;;  %726 = vmatprep.subr.mxu1 %v253_v18  ;;  %v168_v8 = vld [vmem:[#allocation5 + $0x110] sm:$0xff]  ;;  %v233_v9 = vld [vmem:[#allocation5 + $0x318] sm:$0xff]  ;;  %v167_v12 = vld [vmem:[#allocation5 + $0x108] sm:$0xff]  ;;  %v558_v18 = vcombine.high %v556_v11, %v556_v11 }
  0x77   :  { %657 = vmatprep.subr.mxu0 %v187_v19  ;;  %727 = vmatpush2.msra.mxu1 %v252_v20  ;;  %v166_v13 = vld [vmem:[#allocation5 + $0x100] sm:$0xff]  ;;  %v232_v14 = vld [vmem:[#allocation5 + $0x310] sm:$0xff]  ;;  %v231_v15 = vld [vmem:[#allocation5 + $0x308] sm:$0xff] }
  0x78   :  { %658 = vmatpush2.msra.mxu0 %v186_v21  ;;  %728 = vmatprep.subr.mxu1 %v251_v23  ;;  %v293_v16 = vld [vmem:[#allocation5 + $0x4f8] sm:$0xff]  ;;  %v230_v17 = vld [vmem:[#allocation5 + $0x300] sm:$0xff]  ;;  %v292_v19 = vld [vmem:[#allocation5 + $0x4f0] sm:$0xff] }
  0x79   :  { %659 = vmatprep.subr.mxu0 %v185_v22  ;;  %729 = vmatpush2.msra.mxu1 %v250_v25  ;;  %v291_v20 = vld [vmem:[#allocation5 + $0x4e8] sm:$0xff]  ;;  %v357_v21 = vld [vmem:[#allocation5 + $0x6f8] sm:$0xff]  ;;  %v290_v22 = vld [vmem:[#allocation5 + $0x4e0] sm:$0xff] }
  0x7a   :  { %660 = vmatpush2.msra.mxu0 %v184_v24  ;;  %730 = vmatprep.subr.mxu1 %v249_v27  ;;  %v356_v23 = vld [vmem:[#allocation5 + $0x6f0] sm:$0xff]  ;;  %v289_v24 = vld [vmem:[#allocation5 + $0x4d8] sm:$0xff]  ;;  %v355_v25 = vld [vmem:[#allocation5 + $0x6e8] sm:$0xff] }
  0x7b   :  { %661 = vmatprep.subr.mxu0 %v183_v26  ;;  %731 = vmatpush2.msra.mxu1 %v248_v28  ;;  %v288_v26 = vld [vmem:[#allocation5 + $0x4d0] sm:$0xff]  ;;  %v354_v27 = vld [vmem:[#allocation5 + $0x6e0] sm:$0xff]  ;;  %v287_v28 = vld [vmem:[#allocation5 + $0x4c8] sm:$0xff] }
  0x7c   :  { %662 = vmatpush2.msra.mxu0 %v182_v36  ;;  %732 = vmatprep.subr.mxu1 %v247_v37  ;;  %v353_v29 = vld [vmem:[#allocation5 + $0x6d8] sm:$0xff]  ;;  %v286_v30 = vld [vmem:[#allocation5 + $0x4c0] sm:$0xff]  ;;  %v352_v31 = vld [vmem:[#allocation5 + $0x6d0] sm:$0xff] }
  0x7d   :  { %663 = vmatprep.subr.mxu0 %v181_v38  ;;  %733 = vmatpush2.msra.mxu1 %v246_v39  ;;  %v285_v32 = vld [vmem:[#allocation5 + $0x4b8] sm:$0xff]  ;;  %v351_v33 = vld [vmem:[#allocation5 + $0x6c8] sm:$0xff]  ;;  %v284_v34 = vld [vmem:[#allocation5 + $0x4b0] sm:$0xff] }
  0x7e   :  { %664 = vmatpush2.msra.mxu0 %v180_v40  ;;  %734 = vmatprep.subr.mxu1 %v245_v41  ;;  %v350_v35 = vld [vmem:[#allocation5 + $0x6c0] sm:$0xff]  ;;  %v283_v36 = vld [vmem:[#allocation5 + $0x4a8] sm:$0xff]  ;;  %v349_v37 = vld [vmem:[#allocation5 + $0x6b8] sm:$0xff] }
  0x7f   :  { %665 = vmatprep.subr.mxu0 %v179_v46  ;;  %735 = vmatpush2.msra.mxu1 %v244_v47  ;;  %v282_v38 = vld [vmem:[#allocation5 + $0x4a0] sm:$0xff]  ;;  %v348_v39 = vld [vmem:[#allocation5 + $0x6b0] sm:$0xff]  ;;  %v281_v40 = vld [vmem:[#allocation5 + $0x498] sm:$0xff] }
  0x80   :  { %666 = vmatpush2.msra.mxu0 %v178_v48  ;;  %736 = vmatprep.subr.mxu1 %v243_v49  ;;  %v347_v41 = vld [vmem:[#allocation5 + $0x6a8] sm:$0xff]  ;;  %v280_v42 = vld [vmem:[#allocation5 + $0x490] sm:$0xff]  ;;  %v346_v43 = vld [vmem:[#allocation5 + $0x6a0] sm:$0xff] }
  0x81   :  { %667 = vmatprep.subr.mxu0 %v177_v50  ;;  %737 = vmatpush2.msra.mxu1 %v242_v51  ;;  %v279_v45 = vld [vmem:[#allocation5 + $0x488] sm:$0xff]  ;;  %v345_v46 = vld [vmem:[#allocation5 + $0x698] sm:$0xff]  ;;  %v278_v47 = vld [vmem:[#allocation5 + $0x480] sm:$0xff] }
  0x82   :  { %668 = vmatpush2.msra.mxu0 %v176_v52  ;;  %738 = vmatprep.subr.mxu1 %v241_v53  ;;  %v344_v48 = vld [vmem:[#allocation5 + $0x690] sm:$0xff]  ;;  %v277_v49 = vld [vmem:[#allocation5 + $0x478] sm:$0xff]  ;;  %v343_v50 = vld [vmem:[#allocation5 + $0x688] sm:$0xff] }
  0x83   :  { %669 = vmatprep.subr.mxu0 %v175_v56  ;;  %739 = vmatpush2.msra.mxu1 %v240_v57  ;;  %v276_v51 = vld [vmem:[#allocation5 + $0x470] sm:$0xff]  ;;  %v342_v52 = vld [vmem:[#allocation5 + $0x680] sm:$0xff]  ;;  %v275_v53 = vld [vmem:[#allocation5 + $0x468] sm:$0xff] }
  0x84   :  { %670 = vmatpush2.msra.mxu0 %v174_v58  ;;  %740 = vmatprep.subr.mxu1 %v239_v59  ;;  %v341_v54 = vld [vmem:[#allocation5 + $0x678] sm:$0xff]  ;;  %v274_v56 = vld [vmem:[#allocation5 + $0x460] sm:$0xff]  ;;  %v340_v57 = vld [vmem:[#allocation5 + $0x670] sm:$0xff] }
  0x85   :  { %671 = vmatprep.subr.mxu0 %v173_v60  ;;  %741 = vmatpush2.msra.mxu1 %v238_v61  ;;  %v273_v58 = vld [vmem:[#allocation5 + $0x458] sm:$0xff]  ;;  %v339_v59 = vld [vmem:[#allocation5 + $0x668] sm:$0xff]  ;;  %v272_v60 = vld [vmem:[#allocation5 + $0x450] sm:$0xff] }
  0x86   :  { %672 = vmatpush2.msra.mxu0 %v172_v62  ;;  %742 = vmatprep.subr.mxu1 %v237_v63  ;;  %v338_v61 = vld [vmem:[#allocation5 + $0x660] sm:$0xff]  ;;  %v271_v62 = vld [vmem:[#allocation5 + $0x448] sm:$0xff]  ;;  %v337_v63 = vld [vmem:[#allocation5 + $0x658] sm:$0xff] }
  0x87   :  { %673 = vmatprep.subr.mxu0 %v171_v2  ;;  %743 = vmatpush2.msra.mxu1 %v236_v3  ;;  %v336_v1 = vld [vmem:[#allocation5 + $0x650] sm:$0xff]  ;;  %v269_v2 = vld [vmem:[#allocation5 + $0x438] sm:$0xff]  ;;  %v335_v3 = vld [vmem:[#allocation5 + $0x648] sm:$0xff] }
  0x88   :  { %674 = vmatpush2.msra.mxu0 %v170_v4  ;;  %744 = vmatprep.subr.mxu1 %v235_v5  ;;  %v268_v4 = vld [vmem:[#allocation5 + $0x430] sm:$0xff]  ;;  %v334_v5 = vld [vmem:[#allocation5 + $0x640] sm:$0xff] }
  0x89   :  { %675 = vmatprep.subr.mxu0 %v169_v6  ;;  %745 = vmatpush2.msra.mxu1 %v234_v7  ;;  %v267_v6 = vld [vmem:[#allocation5 + $0x428] sm:$0xff]  ;;  %v333_v7 = vld [vmem:[#allocation5 + $0x638] sm:$0xff] }
  0x8a   :  { %676 = vmatpush2.msra.mxu0 %v168_v8  ;;  %746 = vmatprep.subr.mxu1 %v233_v9  ;;  %v266_v8 = vld [vmem:[#allocation5 + $0x420] sm:$0xff]  ;;  %v332_v9 = vld [vmem:[#allocation5 + $0x630] sm:$0xff] }
  0x8b   :  { %677 = vmatprep.subr.mxu0 %v167_v12  ;;  %679 = vmatprep.mubr.f32.mxu0 %v557_v10  ;;  %v265_v10 = vld [vmem:[#allocation5 + $0x418] sm:$0xff]  ;;  %v264_v12 = vld [vmem:[#allocation5 + $0x410] sm:$0xff] }
  0x8c   :  { %678 = vmatpush2.msra.mxu0 %v166_v13  ;;  %747 = vmatpush2.msra.mxu1 %v232_v14  ;;  %v330_v13 = vld [vmem:[#allocation5 + $0x620] sm:$0xff]  ;;  %v263_v14 = vld [vmem:[#allocation5 + $0x408] sm:$0xff] }
  0x8d   :  { %680 = vmatmul.mubr.f32.vlgmr.msra.gmra.mxu0 %v549_v0  ;;  %748 = vmatprep.subr.mxu1 %v231_v15  ;;  %v270_v0 = vld [vmem:[#allocation5 + $0x440] sm:$0xff]  ;;  %v329_v15 = vld [vmem:[#allocation5 + $0x618] sm:$0xff] }
  0x8e   :  { %757 = vmatprep.subr.mxu0 %v293_v16  ;;  %749 = vmatpush2.msra.mxu1 %v230_v17  ;;  %v262_v16 = vld [vmem:[#allocation5 + $0x400] sm:$0xff]  ;;  %v328_v17 = vld [vmem:[#allocation5 + $0x610] sm:$0xff] }
  0x8f   :  { %750 = vmatprep.mubr.f32.mxu1 %v558_v18  ;;  %758 = vmatpush1.msra.mxu0 %v292_v19  ;;  %v325_v18 = vld [vmem:[#allocation5 + $0x5f8] sm:$0xff]  ;;  %v327_v19 = vld [vmem:[#allocation5 + $0x608] sm:$0xff] }
  0x90   :  { %751 = vmatmul.mubr.f32.vlgmr.msra.gmra.mxu1 %v556_v11  ;;  %759 = vmatprep.subr.mxu0 %v291_v20  ;;  %v331_v11 = vld [vmem:[#allocation5 + $0x628] sm:$0xff]  ;;  %v324_v20 = vld [vmem:[#allocation5 + $0x5f0] sm:$0xff] }
  0x91   :  { %828 = vmatprep.subr.mxu1 %v357_v21  ;;  %760 = vmatpush1.msra.mxu0 %v290_v22  ;;  %v326_v21 = vld [vmem:[#allocation5 + $0x600] sm:$0xff]  ;;  %v323_v22 = vld [vmem:[#allocation5 + $0x5e8] sm:$0xff] }
  0x92   :  { %829 = vmatpush1.msra.mxu1 %v356_v23  ;;  %761 = vmatprep.subr.mxu0 %v289_v24  ;;  %v389_v23 = vld [vmem:[#allocation5 + $0x7f8] sm:$0xff]  ;;  %v322_v24 = vld [vmem:[#allocation5 + $0x5e0] sm:$0xff] }
  0x93   :  { %830 = vmatprep.subr.mxu1 %v355_v25  ;;  %762 = vmatpush1.msra.mxu0 %v288_v26  ;;  %v388_v25 = vld [vmem:[#allocation5 + $0x7f0] sm:$0xff]  ;;  %v321_v26 = vld [vmem:[#allocation5 + $0x5d8] sm:$0xff] }
  0x94   :  { %831 = vmatpush1.msra.mxu1 %v354_v27  ;;  %763 = vmatprep.subr.mxu0 %v287_v28  ;;  %v387_v27 = vld [vmem:[#allocation5 + $0x7e8] sm:$0xff]  ;;  %v320_v28 = vld [vmem:[#allocation5 + $0x5d0] sm:$0xff] }
  0x95   :  { %832 = vmatprep.subr.mxu1 %v353_v29  ;;  %764 = vmatpush1.msra.mxu0 %v286_v30  ;;  %v386_v29 = vld [vmem:[#allocation5 + $0x7e0] sm:$0xff]  ;;  %v319_v30 = vld [vmem:[#allocation5 + $0x5c8] sm:$0xff] }
  0x96   :  { %833 = vmatpush1.msra.mxu1 %v352_v31  ;;  %765 = vmatprep.subr.mxu0 %v285_v32  ;;  %v385_v31 = vld [vmem:[#allocation5 + $0x7d8] sm:$0xff]  ;;  %v318_v32 = vld [vmem:[#allocation5 + $0x5c0] sm:$0xff] }
  0x97   :  { %834 = vmatprep.subr.mxu1 %v351_v33  ;;  %766 = vmatpush1.msra.mxu0 %v284_v34  ;;  %v384_v33 = vld [vmem:[#allocation5 + $0x7d0] sm:$0xff]  ;;  %v317_v34 = vld [vmem:[#allocation5 + $0x5b8] sm:$0xff] }
  0x98   :  { %835 = vmatpush1.msra.mxu1 %v350_v35  ;;  %767 = vmatprep.subr.mxu0 %v283_v36  ;;  %v383_v35 = vld [vmem:[#allocation5 + $0x7c8] sm:$0xff]  ;;  %v316_v36 = vld [vmem:[#allocation5 + $0x5b0] sm:$0xff] }
  0x99   :  { %836 = vmatprep.subr.mxu1 %v349_v37  ;;  %768 = vmatpush1.msra.mxu0 %v282_v38  ;;  %v382_v37 = vld [vmem:[#allocation5 + $0x7c0] sm:$0xff]  ;;  %v315_v38 = vld [vmem:[#allocation5 + $0x5a8] sm:$0xff] }
  0x9a   :  { %837 = vmatpush1.msra.mxu1 %v348_v39  ;;  %769 = vmatprep.subr.mxu0 %v281_v40  ;;  %v381_v39 = vld [vmem:[#allocation5 + $0x7b8] sm:$0xff]  ;;  %v314_v40 = vld [vmem:[#allocation5 + $0x5a0] sm:$0xff] }
  0x9b   :  { %838 = vmatprep.subr.mxu1 %v347_v41  ;;  %770 = vmatpush1.msra.mxu0 %v280_v42  ;;  %v380_v41 = vld [vmem:[#allocation5 + $0x7b0] sm:$0xff]  ;;  %v313_v42 = vld [vmem:[#allocation5 + $0x598] sm:$0xff] }
  0x9c   :  { %839 = vmatpush1.msra.mxu1 %v346_v43  ;;  %771 = vmatprep.subr.mxu0 %v279_v45  ;;  %v379_v43 = vld [vmem:[#allocation5 + $0x7a8] sm:$0xff]  ;;  %v312_v45 = vld [vmem:[#allocation5 + $0x590] sm:$0xff] }
  0x9d   :  { %840 = vmatprep.subr.mxu1 %v345_v46  ;;  %772 = vmatpush1.msra.mxu0 %v278_v47  ;;  %v378_v46 = vld [vmem:[#allocation5 + $0x7a0] sm:$0xff]  ;;  %v311_v47 = vld [vmem:[#allocation5 + $0x588] sm:$0xff] }
  0x9e   :  { %841 = vmatpush1.msra.mxu1 %v344_v48  ;;  %773 = vmatprep.subr.mxu0 %v277_v49  ;;  %v377_v48 = vld [vmem:[#allocation5 + $0x798] sm:$0xff]  ;;  %v310_v49 = vld [vmem:[#allocation5 + $0x580] sm:$0xff] }
  0x9f   :  { %842 = vmatprep.subr.mxu1 %v343_v50  ;;  %774 = vmatpush1.msra.mxu0 %v276_v51  ;;  %v104_v50 = vld [vmem:[#allocation2 + $0x8] sm:$0xff] }
  0xa0   :  { %843 = vmatpush1.msra.mxu1 %v342_v52  ;;  %775 = vmatprep.subr.mxu0 %v275_v53  ;;  %v109_v51 = vld [vmem:[#allocation2 + $0x22] sm:$0xff]  ;;  %v123_v53 = vld [vmem:[#allocation2 + $0x56] sm:$0xff] }
  0xa1   :  { %844 = vmatprep.subr.mxu1 %v341_v54  ;;  %776 = vmatpush1.msra.mxu0 %v274_v56  ;;  %v118_v52 = vld [vmem:[#allocation2 + $0x3c] sm:$0xff] }
  0xa2   :  { %845 = vmatpush1.msra.mxu1 %v340_v57  ;;  %777 = vmatprep.subr.mxu0 %v273_v58  ;;  %v376_v54 = vld [vmem:[#allocation5 + $0x790] sm:$0xff]  ;;  %v309_v56 = vld [vmem:[#allocation5 + $0x578] sm:$0xff]  ;;  %v375_v57 = vld [vmem:[#allocation5 + $0x788] sm:$0xff] }
  0xa3   :  { %846 = vmatprep.subr.mxu1 %v339_v59  ;;  %778 = vmatpush1.msra.mxu0 %v272_v60  ;;  %v308_v58 = vld [vmem:[#allocation5 + $0x570] sm:$0xff]  ;;  %v374_v59 = vld [vmem:[#allocation5 + $0x780] sm:$0xff]  ;;  %v307_v60 = vld [vmem:[#allocation5 + $0x568] sm:$0xff] }
  0xa4   :  { %847 = vmatpush1.msra.mxu1 %v338_v61  ;;  %779 = vmatprep.subr.mxu0 %v271_v62  ;;  %v113_v61 = vmax.f32 %v104_v50, %v109_v51  ;;  %v127_v62 = vmax.f32 %v118_v52, %v123_v53  ;;  %v479_v50 = vld [vmem:[#allocation5 + $0xac8] sm:$0xff]  ;;  %v412_v51 = vld [vmem:[#allocation5 + $0x8b0] sm:$0xff]  ;;  %v478_v52 = vld [vmem:[#allocation5 + $0xac0] sm:$0xff] }
  0xa5   :  { %848 = vmatprep.subr.mxu1 %v337_v63  ;;  %780 = vmatpush1.msra.mxu0 %v270_v0  ;;  %v373_v63 = vld [vmem:[#allocation5 + $0x778] sm:$0xff]  ;;  %v306_v0 = vld [vmem:[#allocation5 + $0x560] sm:$0xff]  ;;  %v411_v53 = vld [vmem:[#allocation5 + $0x8a8] sm:$0xff] }
  0xa6   :  { %849 = vmatpush1.msra.mxu1 %v336_v1  ;;  %781 = vmatprep.subr.mxu0 %v269_v2  ;;  %v372_v1 = vld [vmem:[#allocation5 + $0x770] sm:$0xff]  ;;  %v305_v2 = vld [vmem:[#allocation5 + $0x558] sm:$0xff] }
  0xa7   :  { %850 = vmatprep.subr.mxu1 %v335_v3  ;;  %782 = vmatpush1.msra.mxu0 %v268_v4  ;;  %v371_v3 = vld [vmem:[#allocation5 + $0x768] sm:$0xff]  ;;  %v304_v4 = vld [vmem:[#allocation5 + $0x550] sm:$0xff] }
  0xa8   :  { %851 = vmatpush1.msra.mxu1 %v334_v5  ;;  %783 = vmatprep.subr.mxu0 %v267_v6  ;;  %v370_v5 = vld [vmem:[#allocation5 + $0x760] sm:$0xff]  ;;  %v303_v6 = vld [vmem:[#allocation5 + $0x548] sm:$0xff] }
  0xa9   :  { %852 = vmatprep.subr.mxu1 %v333_v7  ;;  %784 = vmatpush1.msra.mxu0 %v266_v8  ;;  %v131_v7 = vmax.f32 %v113_v61, %v127_v62  ;;  %v369_v8 = vld [vmem:[#allocation5 + $0x758] sm:$0xff]  ;;  %v474_v61 = vld [vmem:[#allocation5 + $0xaa0] sm:$0xff]  ;;  %v407_v62 = vld [vmem:[#allocation5 + $0x888] sm:$0xff] }
  0xaa   :  { %853 = vmatpush1.msra.mxu1 %v332_v9  ;;  %785 = vmatprep.subr.mxu0 %v265_v10  ;;  %v302_v9 = vld [vmem:[#allocation5 + $0x540] sm:$0xff]  ;;  %v368_v10 = vld [vmem:[#allocation5 + $0x750] sm:$0xff] }
  0xab   :  { %854 = vmatprep.subr.mxu1 %v331_v11  ;;  %786 = vmatpush1.msra.mxu0 %v264_v12  ;;  %v301_v11 = vld [vmem:[#allocation5 + $0x538] sm:$0xff]  ;;  %v367_v12 = vld [vmem:[#allocation5 + $0x748] sm:$0xff] }
  0xac   :  { %855 = vmatpush1.msra.mxu1 %v330_v13  ;;  %787 = vmatprep.subr.mxu0 %v263_v14  ;;  %v300_v13 = vld [vmem:[#allocation5 + $0x530] sm:$0xff]  ;;  %v366_v14 = vld [vmem:[#allocation5 + $0x740] sm:$0xff] }
  0xad   :  { %856 = vmatprep.subr.mxu1 %v329_v15  ;;  %788 = vmatpush1.msra.mxu0 %v262_v16  ;;  %v299_v15 = vld [vmem:[#allocation5 + $0x528] sm:$0xff]  ;;  %v559_v16 = vcombine.high %v131_v7, %v131_v7 }
  0xae   :  { %857 = vmatpush1.msra.mxu1 %v328_v17  ;;  %789 = vmatprep.subr.mxu0 %v325_v18  ;;  %v365_v17 = vld [vmem:[#allocation5 + $0x738] sm:$0xff]  ;;  %v298_v18 = vld [vmem:[#allocation5 + $0x520] sm:$0xff] }
  0xaf   :  { %858 = vmatprep.subr.mxu1 %v327_v19  ;;  %790 = vmatpush2.msra.mxu0 %v324_v20  ;;  %v566_v19 = vrot.slane %v131_v7, %v1666_v55  ;;  %v364_v20 = vld [vmem:[#allocation5 + $0x730] sm:$0xff]  ;;  %v469_v7 = vld [vmem:[#allocation5 + $0xa78] sm:$0xff] }
  0xb0   :  { %859 = vmatpush1.msra.mxu1 %v326_v21  ;;  %791 = vmatprep.subr.mxu0 %v323_v22  ;;  %v297_v21 = vld [vmem:[#allocation5 + $0x518] sm:$0xff]  ;;  %v363_v22 = vld [vmem:[#allocation5 + $0x728] sm:$0xff] }
  0xb1   :  { %860 = vmatprep.subr.mxu1 %v389_v23  ;;  %792 = vmatpush2.msra.mxu0 %v322_v24  ;;  %v296_v23 = vld [vmem:[#allocation5 + $0x510] sm:$0xff]  ;;  %v362_v24 = vld [vmem:[#allocation5 + $0x720] sm:$0xff] }
  0xb2   :  { %861 = vmatpush2.msra.mxu1 %v388_v25  ;;  %793 = vmatprep.subr.mxu0 %v321_v26  ;;  %v295_v25 = vld [vmem:[#allocation5 + $0x508] sm:$0xff]  ;;  %v573_v26 = vrot.slane %v559_v16, %v1666_v55  ;;  %v398_v16 = vld [vmem:[#allocation5 + $0x840] sm:$0xff] }
  0xb3   :  { %862 = vmatprep.subr.mxu1 %v387_v27  ;;  %794 = vmatpush2.msra.mxu0 %v320_v28  ;;  %v361_v27 = vld [vmem:[#allocation5 + $0x718] sm:$0xff]  ;;  %v294_v28 = vld [vmem:[#allocation5 + $0x500] sm:$0xff] }
  0xb4   :  { %863 = vmatpush2.msra.mxu1 %v386_v29  ;;  %795 = vmatprep.subr.mxu0 %v319_v30  ;;  %v574_v29 = vcombine.high %v566_v19, %v566_v19  ;;  %v360_v30 = vld [vmem:[#allocation5 + $0x710] sm:$0xff] }
  0xb5   :  { %864 = vmatprep.subr.mxu1 %v385_v31  ;;  %796 = vmatpush2.msra.mxu0 %v318_v32  ;;  %v359_v31 = vld [vmem:[#allocation5 + $0x708] sm:$0xff]  ;;  %v421_v32 = vld [vmem:[#allocation5 + $0x8f8] sm:$0xff] }
  0xb6   :  { %865 = vmatpush2.msra.mxu1 %v384_v33  ;;  %797 = vmatprep.subr.mxu0 %v317_v34  ;;  %v358_v33 = vld [vmem:[#allocation5 + $0x700] sm:$0xff]  ;;  %v575_v34 = vcombine.high %v573_v26, %v573_v26 }
  0xb7   :  { %866 = vmatprep.subr.mxu1 %v383_v35  ;;  %798 = vmatpush2.msra.mxu0 %v316_v36  ;;  %v420_v35 = vld [vmem:[#allocation5 + $0x8f0] sm:$0xff]  ;;  %v419_v36 = vld [vmem:[#allocation5 + $0x8e8] sm:$0xff] }
  0xb8   :  { %867 = vmatpush2.msra.mxu1 %v382_v37  ;;  %799 = vmatprep.subr.mxu0 %v315_v38  ;;  %v485_v37 = vld [vmem:[#allocation5 + $0xaf8] sm:$0xff]  ;;  %v418_v38 = vld [vmem:[#allocation5 + $0x8e0] sm:$0xff] }
  0xb9   :  { %868 = vmatprep.subr.mxu1 %v381_v39  ;;  %800 = vmatpush2.msra.mxu0 %v314_v40  ;;  %v484_v39 = vld [vmem:[#allocation5 + $0xaf0] sm:$0xff]  ;;  %v417_v40 = vld [vmem:[#allocation5 + $0x8d8] sm:$0xff] }
  0xba   :  { %869 = vmatpush2.msra.mxu1 %v380_v41  ;;  %801 = vmatprep.subr.mxu0 %v313_v42  ;;  %v483_v41 = vld [vmem:[#allocation5 + $0xae8] sm:$0xff]  ;;  %v416_v42 = vld [vmem:[#allocation5 + $0x8d0] sm:$0xff] }
  0xbb   :  { %870 = vmatprep.subr.mxu1 %v379_v43  ;;  %802 = vmatpush2.msra.mxu0 %v312_v45  ;;  %v482_v43 = vld [vmem:[#allocation5 + $0xae0] sm:$0xff]  ;;  %v415_v45 = vld [vmem:[#allocation5 + $0x8c8] sm:$0xff] }
  0xbc   :  { %871 = vmatpush2.msra.mxu1 %v378_v46  ;;  %803 = vmatprep.subr.mxu0 %v311_v47  ;;  %v481_v46 = vld [vmem:[#allocation5 + $0xad8] sm:$0xff]  ;;  %v414_v47 = vld [vmem:[#allocation5 + $0x8c0] sm:$0xff] }
  0xbd   :  { %872 = vmatprep.subr.mxu1 %v377_v48  ;;  %804 = vmatpush2.msra.mxu0 %v310_v49  ;;  %v480_v48 = vld [vmem:[#allocation5 + $0xad0] sm:$0xff]  ;;  %v413_v49 = vld [vmem:[#allocation5 + $0x8b8] sm:$0xff] }
  0xbe   :  { %873 = vmatpush2.msra.mxu1 %v376_v54  ;;  %805 = vmatprep.subr.mxu0 %v309_v56  ;;  %v477_v54 = vld [vmem:[#allocation5 + $0xab8] sm:$0xff]  ;;  %v410_v56 = vld [vmem:[#allocation5 + $0x8a0] sm:$0xff] }
  0xbf   :  { %874 = vmatprep.subr.mxu1 %v375_v57  ;;  %806 = vmatpush2.msra.mxu0 %v308_v58  ;;  %v476_v57 = vld [vmem:[#allocation5 + $0xab0] sm:$0xff]  ;;  %v409_v58 = vld [vmem:[#allocation5 + $0x898] sm:$0xff] }
  0xc0   :  { %875 = vmatpush2.msra.mxu1 %v374_v59  ;;  %807 = vmatprep.subr.mxu0 %v307_v60  ;;  %v475_v59 = vld [vmem:[#allocation5 + $0xaa8] sm:$0xff]  ;;  %v408_v60 = vld [vmem:[#allocation5 + $0x890] sm:$0xff] }
  0xc1   :  { %876 = vmatprep.subr.mxu1 %v373_v63  ;;  %808 = vmatpush2.msra.mxu0 %v306_v0  ;;  %v473_v63 = vld [vmem:[#allocation5 + $0xa98] sm:$0xff]  ;;  %v406_v0 = vld [vmem:[#allocation5 + $0x880] sm:$0xff] }
  0xc2   :  { %877 = vmatpush2.msra.mxu1 %v372_v1  ;;  %809 = vmatprep.subr.mxu0 %v305_v2  ;;  %v472_v1 = vld [vmem:[#allocation5 + $0xa90] sm:$0xff]  ;;  %v405_v2 = vld [vmem:[#allocation5 + $0x878] sm:$0xff] }
  0xc3   :  { %878 = vmatprep.subr.mxu1 %v371_v3  ;;  %810 = vmatpush2.msra.mxu0 %v304_v4  ;;  %v471_v3 = vld [vmem:[#allocation5 + $0xa88] sm:$0xff]  ;;  %v404_v4 = vld [vmem:[#allocation5 + $0x870] sm:$0xff] }
  0xc4   :  { %879 = vmatpush2.msra.mxu1 %v370_v5  ;;  %811 = vmatprep.subr.mxu0 %v303_v6  ;;  %v470_v5 = vld [vmem:[#allocation5 + $0xa80] sm:$0xff]  ;;  %v403_v6 = vld [vmem:[#allocation5 + $0x868] sm:$0xff] }
  0xc5   :  { %880 = vmatprep.subr.mxu1 %v369_v8  ;;  %812 = vmatpush2.msra.mxu0 %v302_v9  ;;  %v402_v8 = vld [vmem:[#allocation5 + $0x860] sm:$0xff]  ;;  %v468_v9 = vld [vmem:[#allocation5 + $0xa70] sm:$0xff] }
  0xc6   :  { %881 = vmatpush2.msra.mxu1 %v368_v10  ;;  %813 = vmatprep.subr.mxu0 %v301_v11  ;;  %v401_v10 = vld [vmem:[#allocation5 + $0x858] sm:$0xff]  ;;  %v467_v11 = vld [vmem:[#allocation5 + $0xa68] sm:$0xff] }
  0xc7   :  { %882 = vmatprep.subr.mxu1 %v367_v12  ;;  %814 = vmatpush2.msra.mxu0 %v300_v13  ;;  %v400_v12 = vld [vmem:[#allocation5 + $0x850] sm:$0xff]  ;;  %v466_v13 = vld [vmem:[#allocation5 + $0xa60] sm:$0xff] }
  0xc8   :  { %883 = vmatpush2.msra.mxu1 %v366_v14  ;;  %815 = vmatprep.subr.mxu0 %v299_v15  ;;  %v399_v14 = vld [vmem:[#allocation5 + $0x848] sm:$0xff]  ;;  %v465_v15 = vld [vmem:[#allocation5 + $0xa58] sm:$0xff] }
  0xc9   :  { %884 = vmatprep.subr.mxu1 %v365_v17  ;;  %816 = vmatpush2.msra.mxu0 %v298_v18  ;;  %v464_v17 = vld [vmem:[#allocation5 + $0xa50] sm:$0xff]  ;;  %v397_v18 = vld [vmem:[#allocation5 + $0x838] sm:$0xff] }
  0xca   :  { %885 = vmatpush2.msra.mxu1 %v364_v20  ;;  %817 = vmatprep.subr.mxu0 %v297_v21  ;;  %v396_v20 = vld [vmem:[#allocation5 + $0x830] sm:$0xff]  ;;  %v462_v21 = vld [vmem:[#allocation5 + $0xa40] sm:$0xff] }
  0xcb   :  { %886 = vmatprep.subr.mxu1 %v363_v22  ;;  %818 = vmatpush2.msra.mxu0 %v296_v23  ;;  %v395_v22 = vld [vmem:[#allocation5 + $0x828] sm:$0xff]  ;;  %v461_v23 = vld [vmem:[#allocation5 + $0xa38] sm:$0xff] }
  0xcc   :  { %887 = vmatpush2.msra.mxu1 %v362_v24  ;;  %819 = vmatprep.subr.mxu0 %v295_v25  ;;  %v394_v24 = vld [vmem:[#allocation5 + $0x820] sm:$0xff]  ;;  %v460_v25 = vld [vmem:[#allocation5 + $0xa30] sm:$0xff] }
  0xcd   :  { %888 = vmatprep.subr.mxu1 %v361_v27  ;;  %820 = vmatpush2.msra.mxu0 %v294_v28  ;;  %v459_v27 = vld [vmem:[#allocation5 + $0xa28] sm:$0xff]  ;;  %v392_v28 = vld [vmem:[#allocation5 + $0x810] sm:$0xff] }
  0xce   :  { %821 = vmatprep.mubr.f32.mxu0 %v574_v29  ;;  %889 = vmatpush2.msra.mxu1 %v360_v30  ;;  %v458_v29 = vld [vmem:[#allocation5 + $0xa20] sm:$0xff]  ;;  %v391_v30 = vld [vmem:[#allocation5 + $0x808] sm:$0xff] }
  0xcf   :  { %822 = vmatmul.mubr.f32.vlgmr.msra.gmra.mxu0 %v566_v19  ;;  %890 = vmatprep.subr.mxu1 %v359_v31  ;;  %v463_v19 = vld [vmem:[#allocation5 + $0xa48] sm:$0xff]  ;;  %v457_v31 = vld [vmem:[#allocation5 + $0xa18] sm:$0xff] }
  0xd0   :  { %899 = vmatprep.subr.mxu0 %v421_v32  ;;  %891 = vmatpush2.msra.mxu1 %v358_v33  ;;  %v390_v32 = vld [vmem:[#allocation5 + $0x800] sm:$0xff]  ;;  %v456_v33 = vld [vmem:[#allocation5 + $0xa10] sm:$0xff] }
  0xd1   :  { %892 = vmatprep.mubr.f32.mxu1 %v575_v34  ;;  %900 = vmatpush1.msra.mxu0 %v420_v35  ;;  %v453_v34 = vld [vmem:[#allocation5 + $0x9f8] sm:$0xff]  ;;  %v455_v35 = vld [vmem:[#allocation5 + $0xa08] sm:$0xff] }
  0xd2   :  { %893 = vmatmul.mubr.f32.vlgmr.msra.gmra.mxu1 %v573_v26  ;;  %901 = vmatprep.subr.mxu0 %v419_v36  ;;  %v393_v26 = vld [vmem:[#allocation5 + $0x818] sm:$0xff]  ;;  %v452_v36 = vld [vmem:[#allocation5 + $0x9f0] sm:$0xff] }
  0xd3   :  { %970 = vmatprep.subr.mxu1 %v485_v37  ;;  %902 = vmatpush1.msra.mxu0 %v418_v38  ;;  %v454_v37 = vld [vmem:[#allocation5 + $0xa00] sm:$0xff]  ;;  %v451_v38 = vld [vmem:[#allocation5 + $0x9e8] sm:$0xff] }
  0xd4   :  { %971 = vmatpush1.msra.mxu1 %v484_v39  ;;  %903 = vmatprep.subr.mxu0 %v417_v40  ;;  %v517_v39 = vld [vmem:[#allocation5 + $0xbf8] sm:$0xff]  ;;  %v450_v40 = vld [vmem:[#allocation5 + $0x9e0] sm:$0xff] }
  0xd5   :  { %972 = vmatprep.subr.mxu1 %v483_v41  ;;  %904 = vmatpush1.msra.mxu0 %v416_v42  ;;  %v516_v41 = vld [vmem:[#allocation5 + $0xbf0] sm:$0xff]  ;;  %v449_v42 = vld [vmem:[#allocation5 + $0x9d8] sm:$0xff] }
  0xd6   :  { %973 = vmatpush1.msra.mxu1 %v482_v43  ;;  %905 = vmatprep.subr.mxu0 %v415_v45  ;;  %v515_v43 = vld [vmem:[#allocation5 + $0xbe8] sm:$0xff]  ;;  %v448_v45 = vld [vmem:[#allocation5 + $0x9d0] sm:$0xff] }
  0xd7   :  { %974 = vmatprep.subr.mxu1 %v481_v46  ;;  %906 = vmatpush1.msra.mxu0 %v414_v47  ;;  %v514_v46 = vld [vmem:[#allocation5 + $0xbe0] sm:$0xff]  ;;  %v447_v47 = vld [vmem:[#allocation5 + $0x9c8] sm:$0xff] }
  0xd8   :  { %975 = vmatpush1.msra.mxu1 %v480_v48  ;;  %907 = vmatprep.subr.mxu0 %v413_v49  ;;  %v513_v48 = vld [vmem:[#allocation5 + $0xbd8] sm:$0xff]  ;;  %v446_v49 = vld [vmem:[#allocation5 + $0x9c0] sm:$0xff] }
  0xd9   :  { %976 = vmatprep.subr.mxu1 %v479_v50  ;;  %908 = vmatpush1.msra.mxu0 %v412_v51  ;;  %v512_v50 = vld [vmem:[#allocation5 + $0xbd0] sm:$0xff]  ;;  %v445_v51 = vld [vmem:[#allocation5 + $0x9b8] sm:$0xff] }
  0xda   :  { %977 = vmatpush1.msra.mxu1 %v478_v52  ;;  %909 = vmatprep.subr.mxu0 %v411_v53  ;;  %v511_v52 = vld [vmem:[#allocation5 + $0xbc8] sm:$0xff]  ;;  %v444_v53 = vld [vmem:[#allocation5 + $0x9b0] sm:$0xff] }
  0xdb   :  { %978 = vmatprep.subr.mxu1 %v477_v54  ;;  %910 = vmatpush1.msra.mxu0 %v410_v56  ;;  %v510_v54 = vld [vmem:[#allocation5 + $0xbc0] sm:$0xff]  ;;  %v443_v56 = vld [vmem:[#allocation5 + $0x9a8] sm:$0xff] }
  0xdc   :  { %979 = vmatpush1.msra.mxu1 %v476_v57  ;;  %911 = vmatprep.subr.mxu0 %v409_v58  ;;  %v509_v57 = vld [vmem:[#allocation5 + $0xbb8] sm:$0xff]  ;;  %v442_v58 = vld [vmem:[#allocation5 + $0x9a0] sm:$0xff] }
  0xdd   :  { %980 = vmatprep.subr.mxu1 %v475_v59  ;;  %912 = vmatpush1.msra.mxu0 %v408_v60  ;;  %v508_v59 = vld [vmem:[#allocation5 + $0xbb0] sm:$0xff]  ;;  %v441_v60 = vld [vmem:[#allocation5 + $0x998] sm:$0xff] }
  0xde   :  { %981 = vmatpush1.msra.mxu1 %v474_v61  ;;  %913 = vmatprep.subr.mxu0 %v407_v62  ;;  %v507_v61 = vld [vmem:[#allocation5 + $0xba8] sm:$0xff]  ;;  %v440_v62 = vld [vmem:[#allocation5 + $0x990] sm:$0xff] }
  0xdf   :  { %982 = vmatprep.subr.mxu1 %v473_v63  ;;  %914 = vmatpush1.msra.mxu0 %v406_v0  ;;  %v506_v63 = vld [vmem:[#allocation5 + $0xba0] sm:$0xff]  ;;  %v439_v0 = vld [vmem:[#allocation5 + $0x988] sm:$0xff] }
  0xe0   :  { %983 = vmatpush1.msra.mxu1 %v472_v1  ;;  %915 = vmatprep.subr.mxu0 %v405_v2  ;;  %v505_v1 = vld [vmem:[#allocation5 + $0xb98] sm:$0xff]  ;;  %v438_v2 = vld [vmem:[#allocation5 + $0x980] sm:$0xff] }
  0xe1   :  { %984 = vmatprep.subr.mxu1 %v471_v3  ;;  %916 = vmatpush1.msra.mxu0 %v404_v4  ;;  %v105_v3 = vld [vmem:[#allocation2 + $0x10] sm:$0xff] }
  0xe2   :  { %985 = vmatpush1.msra.mxu1 %v470_v5  ;;  %917 = vmatprep.subr.mxu0 %v403_v6  ;;  %v110_v4 = vld [vmem:[#allocation2 + $0x2a] sm:$0xff]  ;;  %v124_v6 = vld [vmem:[#allocation2 + $0x5e] sm:$0xff] }
  0xe3   :  { %986 = vmatprep.subr.mxu1 %v469_v7  ;;  %918 = vmatpush1.msra.mxu0 %v402_v8  ;;  %v119_v5 = vld [vmem:[#allocation2 + $0x44] sm:$0xff]  ;;  %v504_v7 = vld [vmem:[#allocation5 + $0xb90] sm:$0xff] }
  0xe4   :  { %987 = vmatpush1.msra.mxu1 %v468_v9  ;;  %919 = vmatprep.subr.mxu0 %v401_v10  ;;  %v437_v8 = vld [vmem:[#allocation5 + $0x978] sm:$0xff]  ;;  %v503_v9 = vld [vmem:[#allocation5 + $0xb88] sm:$0xff]  ;;  %v436_v10 = vld [vmem:[#allocation5 + $0x970] sm:$0xff] }
  0xe5   :  { %988 = vmatprep.subr.mxu1 %v467_v11  ;;  %920 = vmatpush1.msra.mxu0 %v400_v12  ;;  %v502_v11 = vld [vmem:[#allocation5 + $0xb80] sm:$0xff]  ;;  %v435_v12 = vld [vmem:[#allocation5 + $0x968] sm:$0xff] }
  0xe6   :  { %989 = vmatpush1.msra.mxu1 %v466_v13  ;;  %921 = vmatprep.subr.mxu0 %v399_v14  ;;  %v114_v13 = vmax.f32 %v105_v3, %v110_v4  ;;  %v128_v14 = vmax.f32 %v119_v5, %v124_v6  ;;  %v1145_v3 = vld [vmem:[#allocation8 + $0xf8] sm:$0xff]  ;;  %v1144_v4 = vld [vmem:[#allocation8 + $0xf0] sm:$0xff]  ;;  %v1143_v5 = vld [vmem:[#allocation8 + $0xe8] sm:$0xff] }
  0xe7   :  { %990 = vmatprep.subr.mxu1 %v465_v15  ;;  %922 = vmatpush1.msra.mxu0 %v398_v16  ;;  %v501_v15 = vld [vmem:[#allocation5 + $0xb78] sm:$0xff]  ;;  %v434_v16 = vld [vmem:[#allocation5 + $0x960] sm:$0xff] }
  0xe8   :  { %991 = vmatpush1.msra.mxu1 %v464_v17  ;;  %923 = vmatprep.subr.mxu0 %v397_v18  ;;  %v500_v17 = vld [vmem:[#allocation5 + $0xb70] sm:$0xff]  ;;  %v433_v18 = vld [vmem:[#allocation5 + $0x958] sm:$0xff]  ;;  %v518_v6 = vld [vmem:[#allocation5 + $0xc00] sm:$0xff] }
  0xe9   :  { %992 = vmatprep.subr.mxu1 %v463_v19  ;;  %924 = vmatpush1.msra.mxu0 %v396_v20  ;;  %v499_v19 = vld [vmem:[#allocation5 + $0xb68] sm:$0xff]  ;;  %v432_v20 = vld [vmem:[#allocation5 + $0x950] sm:$0xff] }
  0xea   :  { %993 = vmatpush1.msra.mxu1 %v462_v21  ;;  %925 = vmatprep.subr.mxu0 %v395_v22  ;;  %v498_v21 = vld [vmem:[#allocation5 + $0xb60] sm:$0xff]  ;;  %v431_v22 = vld [vmem:[#allocation5 + $0x948] sm:$0xff] }
  0xeb   :  { %994 = vmatprep.subr.mxu1 %v461_v23  ;;  %926 = vmatpush1.msra.mxu0 %v394_v24  ;;  %v132_v23 = vmax.f32 %v114_v13, %v128_v14  ;;  %v497_v24 = vld [vmem:[#allocation5 + $0xb58] sm:$0xff] }
  0xec   :  { %995 = vmatpush1.msra.mxu1 %v460_v25  ;;  %927 = vmatprep.subr.mxu0 %v393_v26  ;;  %v430_v25 = vld [vmem:[#allocation5 + $0x940] sm:$0xff]  ;;  %v496_v26 = vld [vmem:[#allocation5 + $0xb50] sm:$0xff] }
  0xed   :  { %996 = vmatprep.subr.mxu1 %v459_v27  ;;  %928 = vmatpush1.msra.mxu0 %v392_v28  ;;  %v429_v27 = vld [vmem:[#allocation5 + $0x938] sm:$0xff]  ;;  %v495_v28 = vld [vmem:[#allocation5 + $0xb48] sm:$0xff] }
  0xee   :  { %997 = vmatpush1.msra.mxu1 %v458_v29  ;;  %929 = vmatprep.subr.mxu0 %v391_v30  ;;  %v428_v29 = vld [vmem:[#allocation5 + $0x930] sm:$0xff]  ;;  %v494_v30 = vld [vmem:[#allocation5 + $0xb40] sm:$0xff] }
  0xef   :  { %998 = vmatprep.subr.mxu1 %v457_v31  ;;  %930 = vmatpush1.msra.mxu0 %v390_v32  ;;  %v427_v31 = vld [vmem:[#allocation5 + $0x928] sm:$0xff]  ;;  %v576_v32 = vcombine.high %v132_v23, %v132_v23  ;;  %v1137_v13 = vld [vmem:[#allocation8 + $0xb8] sm:$0xff]  ;;  %v1136_v14 = vld [vmem:[#allocation8 + $0xb0] sm:$0xff] }
  0xf0   :  { %999 = vmatpush1.msra.mxu1 %v456_v33  ;;  %931 = vmatprep.subr.mxu0 %v453_v34  ;;  %v493_v33 = vld [vmem:[#allocation5 + $0xb38] sm:$0xff]  ;;  %v426_v34 = vld [vmem:[#allocation5 + $0x920] sm:$0xff] }
  0xf1   :  { %1000 = vmatprep.subr.mxu1 %v455_v35  ;;  %932 = vmatpush2.msra.mxu0 %v452_v36  ;;  %v492_v35 = vld [vmem:[#allocation5 + $0xb30] sm:$0xff]  ;;  %v583_v36 = vrot.slane %v132_v23, %v1666_v55  ;;  %v1126_v23 = vld [vmem:[#allocation8 + $0x60] sm:$0xff] }
  0xf2   :  { %1001 = vmatpush1.msra.mxu1 %v454_v37  ;;  %933 = vmatprep.subr.mxu0 %v451_v38  ;;  %v425_v37 = vld [vmem:[#allocation5 + $0x918] sm:$0xff]  ;;  %v491_v38 = vld [vmem:[#allocation5 + $0xb28] sm:$0xff] }
  0xf3   :  { %1002 = vmatprep.subr.mxu1 %v517_v39  ;;  %934 = vmatpush2.msra.mxu0 %v450_v40  ;;  %v424_v39 = vld [vmem:[#allocation5 + $0x910] sm:$0xff]  ;;  %v490_v40 = vld [vmem:[#allocation5 + $0xb20] sm:$0xff] }
  0xf4   :  { %1003 = vmatpush2.msra.mxu1 %v516_v41  ;;  %935 = vmatprep.subr.mxu0 %v449_v42  ;;  %v423_v41 = vld [vmem:[#allocation5 + $0x908] sm:$0xff]  ;;  %v106_v42 = vld [vmem:[#allocation2 + $0x18] sm:$0x3] }
  0xf5   :  { %1004 = vmatprep.subr.mxu1 %v515_v43  ;;  %936 = vmatpush2.msra.mxu0 %v448_v45  ;;  %v590_v43 = vrot.slane %v576_v32, %v1666_v55  ;;  %v111_v45 = vld [vmem:[#allocation2 + $0x32] sm:$0x3]  ;;  %v1117_v32 = vld [vmem:[#allocation8 + $0x18] sm:$0xff] }
  0xf6   :  { %1005 = vmatpush2.msra.mxu1 %v514_v46  ;;  %937 = vmatprep.subr.mxu0 %v447_v47  ;;  %v120_v46 = vld [vmem:[#allocation2 + $0x4c] sm:$0x3]  ;;  %v125_v47 = vld [vmem:[#allocation2 + $0x66] sm:$0x3] }
  0xf7   :  { %1006 = vmatprep.subr.mxu1 %v513_v48  ;;  %938 = vmatpush2.msra.mxu0 %v446_v49  ;;  %v489_v48 = vld [vmem:[#allocation5 + $0xb18] sm:$0xff]  ;;  %v422_v49 = vld [vmem:[#allocation5 + $0x900] sm:$0xff] }
  0xf8   :  { %1007 = vmatpush2.msra.mxu1 %v512_v50  ;;  %939 = vmatprep.subr.mxu0 %v445_v51  ;;  %v591_v50 = vcombine.high %v583_v36, %v583_v36  ;;  %v488_v51 = vld [vmem:[#allocation5 + $0xb10] sm:$0xff] }
  0xf9   :  { %1008 = vmatprep.subr.mxu1 %v511_v52  ;;  %940 = vmatpush2.msra.mxu0 %v444_v53  ;;  %v487_v52 = vld [vmem:[#allocation5 + $0xb08] sm:$0xff]  ;;  %v115_v53 = vmax.f32 %v106_v42, %v111_v45  ;;  %v1169_v45 = vld [vmem:[#allocation8 + $0x1b8] sm:$0xff] }
  0xfa   :  { %1009 = vmatpush2.msra.mxu1 %v510_v54  ;;  %941 = vmatprep.subr.mxu0 %v443_v56  ;;  %v129_v54 = vmax.f32 %v120_v46, %v125_v47  ;;  %v525_v56 = vld [vmem:[#allocation5 + $0xc38] sm:$0xff]  ;;  %v1171_v42 = vld [vmem:[#allocation8 + $0x1c8] sm:$0xff] }
  0xfb   :  { %1010 = vmatprep.subr.mxu1 %v509_v57  ;;  %942 = vmatpush2.msra.mxu0 %v442_v58  ;;  %v486_v57 = vld [vmem:[#allocation5 + $0xb00] sm:$0xff]  ;;  %v592_v58 = vcombine.high %v590_v43, %v590_v43  ;;  %v1168_v46 = vld [vmem:[#allocation8 + $0x1b0] sm:$0xff]  ;;  %v1167_v47 = vld [vmem:[#allocation8 + $0x1a8] sm:$0xff] }
  0xfc   :  { %1011 = vmatpush2.msra.mxu1 %v508_v59  ;;  %943 = vmatprep.subr.mxu0 %v441_v60  ;;  %v524_v59 = vld [vmem:[#allocation5 + $0xc30] sm:$0xff]  ;;  %v523_v60 = vld [vmem:[#allocation5 + $0xc28] sm:$0xff] }
  0xfd   :  { %1012 = vmatprep.subr.mxu1 %v507_v61  ;;  %944 = vmatpush2.msra.mxu0 %v440_v62  ;;  %v522_v61 = vld [vmem:[#allocation5 + $0xc20] sm:$0xff]  ;;  %v133_v62 = vmax.f32 %v115_v53, %v129_v54  ;;  %v1160_v54 = vld [vmem:[#allocation8 + $0x170] sm:$0xff] }
  0xfe   :  { %1013 = vmatpush2.msra.mxu1 %v506_v63  ;;  %945 = vmatprep.subr.mxu0 %v439_v0  ;;  %v521_v63 = vld [vmem:[#allocation5 + $0xc18] sm:$0xff]  ;;  %v520_v0 = vld [vmem:[#allocation5 + $0xc10] sm:$0xff] }
  0xff   :  { %1014 = vmatprep.subr.mxu1 %v505_v1  ;;  %946 = vmatpush2.msra.mxu0 %v438_v2  ;;  %v519_v1 = vld [vmem:[#allocation5 + $0xc08] sm:$0xff]  ;;  %v1603_v2 = vmov 0.0   ;;  %v1161_v53 = vld [vmem:[#allocation8 + $0x178] sm:$0xff] }
 0x100   :  { %1015 = vmatpush2.msra.mxu1 %v504_v7  ;;  %947 = vmatprep.subr.mxu0 %v437_v8  ;;  %v599_v7 = vrot.slane %v133_v62, %v1666_v55  ;;  %v1142_v8 = vld [vmem:[#allocation8 + $0xe0] sm:$0xff]  ;;  %v1135_v55 = vld [vmem:[#allocation8 + $0xa8] sm:$0xff]  ;;  %v1153_v62 = vld [vmem:[#allocation8 + $0x138] sm:$0xff] }
 0x101   :  { %1016 = vmatprep.subr.mxu1 %v503_v9  ;;  %948 = vmatpush2.msra.mxu0 %v436_v10  ;;  %v1141_v9 = vld [vmem:[#allocation8 + $0xd8] sm:$0xff]  ;;  %v1140_v10 = vld [vmem:[#allocation8 + $0xd0] sm:$0xff] }
 0x102   :  { %1017 = vmatpush2.msra.mxu1 %v502_v11  ;;  %949 = vmatprep.subr.mxu0 %v435_v12  ;;  %v1139_v11 = vld [vmem:[#allocation8 + $0xc8] sm:$0xff]  ;;  %v1138_v12 = vld [vmem:[#allocation8 + $0xc0] sm:$0xff] }
 0x103   :  { %1018 = vmatprep.subr.mxu1 %v501_v15  ;;  %950 = vmatpush2.msra.mxu0 %v434_v16  ;;  %v1134_v15 = vld [vmem:[#allocation8 + $0xa0] sm:$0xff]  ;;  %v1133_v16 = vld [vmem:[#allocation8 + $0x98] sm:$0xff] }
 0x104   :  { %1019 = vmatpush2.msra.mxu1 %v500_v17  ;;  %951 = vmatprep.subr.mxu0 %v433_v18  ;;  %v1132_v17 = vld [vmem:[#allocation8 + $0x90] sm:$0xff]  ;;  %v1131_v18 = vld [vmem:[#allocation8 + $0x88] sm:$0xff] }
 0x105   :  { %1020 = vmatprep.subr.mxu1 %v499_v19  ;;  %952 = vmatpush2.msra.mxu0 %v432_v20  ;;  %v1130_v19 = vld [vmem:[#allocation8 + $0x80] sm:$0xff]  ;;  %v1129_v20 = vld [vmem:[#allocation8 + $0x78] sm:$0xff] }
 0x106   :  { %1021 = vmatpush2.msra.mxu1 %v498_v21  ;;  %953 = vmatprep.subr.mxu0 %v431_v22  ;;  %v1128_v21 = vld [vmem:[#allocation8 + $0x70] sm:$0xff]  ;;  %v1127_v22 = vld [vmem:[#allocation8 + $0x68] sm:$0xff] }
 0x107   :  { %1022 = vmatprep.subr.mxu1 %v497_v24  ;;  %954 = vmatpush2.msra.mxu0 %v430_v25  ;;  %v1125_v24 = vld [vmem:[#allocation8 + $0x58] sm:$0xff]  ;;  %v1124_v25 = vld [vmem:[#allocation8 + $0x50] sm:$0xff] }
 0x108   :  { %1023 = vmatpush2.msra.mxu1 %v496_v26  ;;  %955 = vmatprep.subr.mxu0 %v429_v27  ;;  %v1123_v26 = vld [vmem:[#allocation8 + $0x48] sm:$0xff]  ;;  %v1122_v27 = vld [vmem:[#allocation8 + $0x40] sm:$0xff] }
 0x109   :  { %1024 = vmatprep.subr.mxu1 %v495_v28  ;;  %956 = vmatpush2.msra.mxu0 %v428_v29  ;;  %v1121_v28 = vld [vmem:[#allocation8 + $0x38] sm:$0xff]  ;;  %v1120_v29 = vld [vmem:[#allocation8 + $0x30] sm:$0xff] }
 0x10a   :  { %1025 = vmatpush2.msra.mxu1 %v494_v30  ;;  %957 = vmatprep.subr.mxu0 %v427_v31  ;;  %v1119_v30 = vld [vmem:[#allocation8 + $0x28] sm:$0xff]  ;;  %v1118_v31 = vld [vmem:[#allocation8 + $0x20] sm:$0xff] }
 0x10b   :  { %1026 = vmatprep.subr.mxu1 %v493_v33  ;;  %958 = vmatpush2.msra.mxu0 %v426_v34  ;;  %v1116_v33 = vld [vmem:[#allocation8 + $0x10] sm:$0xff]  ;;  %v1115_v34 = vld [vmem:[#allocation8 + $0x8] sm:$0xff] }
 0x10c   :  { %1027 = vmatpush2.msra.mxu1 %v492_v35  ;;  %959 = vmatprep.subr.mxu0 %v425_v37  ;;  %v1114_v35 = vld [vmem:[#allocation8] sm:$0xff]  ;;  %v1176_v37 = vld [vmem:[#allocation8 + $0x1f0] sm:$0xff] }
 0x10d   :  { %1028 = vmatprep.subr.mxu1 %v491_v38  ;;  %960 = vmatpush2.msra.mxu0 %v424_v39  ;;  %v1175_v38 = vld [vmem:[#allocation8 + $0x1e8] sm:$0xff]  ;;  %v1174_v39 = vld [vmem:[#allocation8 + $0x1e0] sm:$0xff] }
 0x10e   :  { %1029 = vmatpush2.msra.mxu1 %v490_v40  ;;  %961 = vmatprep.subr.mxu0 %v423_v41  ;;  %v1173_v40 = vld [vmem:[#allocation8 + $0x1d8] sm:$0xff]  ;;  %v1172_v41 = vld [vmem:[#allocation8 + $0x1d0] sm:$0xff] }
 0x10f   :  { %1030 = vmatprep.subr.mxu1 %v489_v48  ;;  %962 = vmatpush2.msra.mxu0 %v422_v49  ;;  %v1166_v48 = vld [vmem:[#allocation8 + $0x1a0] sm:$0xff]  ;;  %v1165_v49 = vld [vmem:[#allocation8 + $0x198] sm:$0xff] }
 0x110   :  { %963 = vmatprep.mubr.f32.mxu0 %v591_v50  ;;  %1031 = vmatpush2.msra.mxu1 %v488_v51  ;;  %v1164_v50 = vld [vmem:[#allocation8 + $0x190] sm:$0xff]  ;;  %v1163_v51 = vld [vmem:[#allocation8 + $0x188] sm:$0xff] }
 0x111   :  { %964 = vmatmul.mubr.f32.vlgmr.msra.gmra.mxu0 %v583_v36  ;;  %1032 = vmatprep.subr.mxu1 %v487_v52  ;;  %v1177_v36 = vld [vmem:[#allocation8 + $0x1f8] sm:$0xff]  ;;  %v1162_v52 = vld [vmem:[#allocation8 + $0x180] sm:$0xff] }
 0x112   :  { %1065 = vmatprep.subr.mxu0 %v525_v56  ;;  %1033 = vmatpush2.msra.mxu1 %v486_v57  ;;  %v1159_v56 = vld [vmem:[#allocation8 + $0x168] sm:$0xff]  ;;  %v1158_v57 = vld [vmem:[#allocation8 + $0x160] sm:$0xff] }
 0x113   :  { %1034 = vmatprep.mubr.f32.mxu1 %v592_v58  ;;  %1066 = vmatpush1.msra.mxu0 %v524_v59  ;;  %v1157_v58 = vld [vmem:[#allocation8 + $0x158] sm:$0xff]  ;;  %v1156_v59 = vld [vmem:[#allocation8 + $0x150] sm:$0xff] }
 0x114   :  { %1035 = vmatmul.mubr.f32.vlgmr.msra.gmra.mxu1 %v590_v43  ;;  %1067 = vmatprep.subr.mxu0 %v523_v60  ;;  %v1170_v43 = vld [vmem:[#allocation8 + $0x1c0] sm:$0xff]  ;;  %v1155_v60 = vld [vmem:[#allocation8 + $0x148] sm:$0xff] }
 0x115   :  { %1068 = vmatpush1.msra.mxu0 %v522_v61  ;;  %1105 = vmatprep.mubr.f32.mxu0 %v1603_v2  ;;  %v1154_v61 = vld [vmem:[#allocation8 + $0x140] sm:$0xff]  ;;  %v1149_v2 = vld [vmem:[#allocation8 + $0x118] sm:$0xff] }
 0x116   :  { %1069 = vmatprep.subr.mxu0 %v521_v63  ;;  %1190 = vmatprep.subr.mxu1 %v1145_v3  ;;  %v1152_v63 = vld [vmem:[#allocation8 + $0x130] sm:$0xff] }
 0x117   :  { %1070 = vmatpush1.msra.mxu0 %v520_v0  ;;  %1191 = vmatpush1.msra.mxu1 %v1144_v4  ;;  %v1151_v0 = vld [vmem:[#allocation8 + $0x128] sm:$0xff]  ;;  %v1148_v3 = vld [vmem:[#allocation8 + $0x110] sm:$0xff] }
 0x118   :  { %1071 = vmatprep.subr.mxu0 %v519_v1  ;;  %1192 = vmatprep.subr.mxu1 %v1143_v5  ;;  %v1150_v1 = vld [vmem:[#allocation8 + $0x120] sm:$0xff]  ;;  %v1147_v4 = vld [vmem:[#allocation8 + $0x108] sm:$0xff] }
 0x119   :  { %1072 = vmatpush1.msra.mxu0 %v518_v6  ;;  %1193 = vmatpush1.msra.mxu1 %v1142_v8  ;;  %v1146_v5 = vld [vmem:[#allocation8 + $0x100] sm:$0xff]  ;;  %v1294_v6 = vld [vmem:[%s1781_s5 + $0xf8] sm:$0xff] }
 0x11a   :  { %1392 = vmatmul.mubr.msk.f32.vlgmr.msra.gmra.mxu0 %vm612_vm0, %v599_v7  ;;  %1194 = vmatprep.subr.mxu1 %v1141_v9  ;;  %v1278_v7 = vld [vmem:[%s1781_s5 + $0x78] sm:$0xff]  ;;  %v1293_v8 = vld [vmem:[%s1781_s5 + $0xf0] sm:$0xff] }
 0x11b   :  { %1195 = vmatpush1.msra.mxu1 %v1140_v10  ;;  %1394 = vmatprep.subr.mxu0 %v1294_v6  ;;  %v1277_v9 = vld [vmem:[%s1781_s5 + $0x70] sm:$0xff]  ;;  %v1292_v10 = vld [vmem:[%s1781_s5 + $0xe8] sm:$0xff] }
 0x11c   :  { %1196 = vmatprep.subr.mxu1 %v1139_v11  ;;  %1395 = vmatpush3.msra.mxu0 %v1278_v7  ;;  %v1276_v11 = vld [vmem:[%s1781_s5 + $0x68] sm:$0xff]  ;;  %v1279_v7 = vld [vmem:[%s1781_s5 + $0x80] sm:$0xff] }
 0x11d   :  { %1197 = vmatpush1.msra.mxu1 %v1138_v12  ;;  %1396 = vmatprep.subr.mxu0 %v1293_v8  ;;  %v1291_v12 = vld [vmem:[%s1781_s5 + $0xe0] sm:$0xff]  ;;  %v1264_v6 = vld [vmem:[%s1781_s5 + $0x8] sm:$0xff] }
 0x11e   :  { %1198 = vmatprep.subr.mxu1 %v1137_v13  ;;  %1397 = vmatpush3.msra.mxu0 %v1277_v9  ;;  %v1275_v13 = vld [vmem:[%s1781_s5 + $0x60] sm:$0xff]  ;;  %v1178_v9 = vld [vmem:[#allocation10] sm:$0x3] }
 0x11f   :  { %1199 = vmatpush1.msra.mxu1 %v1136_v14  ;;  %1398 = vmatprep.subr.mxu0 %v1292_v10  ;;  %v1290_v14 = vld [vmem:[%s1781_s5 + $0xd8] sm:$0xff]  ;;  %v1263_v8 = vld [vmem:[%s1781_s5] sm:$0xff] }
 0x120   :  { %1200 = vmatprep.subr.mxu1 %v1135_v55  ;;  %1399 = vmatpush3.msra.mxu0 %v1276_v11  ;;  %v1274_v55 = vld [vmem:[%s1781_s5 + $0x58] sm:$0xff] }
 0x121   :  { %1201 = vmatpush1.msra.mxu1 %v1134_v15  ;;  %1400 = vmatprep.subr.mxu0 %v1291_v12  ;;  %v1289_v15 = vld [vmem:[%s1781_s5 + $0xd0] sm:$0xff] }
 0x122   :  { %1202 = vmatprep.subr.mxu1 %v1133_v16  ;;  %1401 = vmatpush3.msra.mxu0 %v1275_v13  ;;  %v1273_v16 = vld [vmem:[%s1781_s5 + $0x50] sm:$0xff] }
 0x123   :  { %1203 = vmatpush1.msra.mxu1 %v1132_v17  ;;  %1402 = vmatprep.subr.mxu0 %v1290_v14  ;;  %v1288_v17 = vld [vmem:[%s1781_s5 + $0xc8] sm:$0xff] }
 0x124   :  { %1204 = vmatprep.subr.mxu1 %v1131_v18  ;;  %1403 = vmatpush3.msra.mxu0 %v1274_v55  ;;  %v1272_v18 = vld [vmem:[%s1781_s5 + $0x48] sm:$0xff] }
 0x125   :  { %1205 = vmatpush1.msra.mxu1 %v1130_v19  ;;  %1404 = vmatprep.subr.mxu0 %v1289_v15  ;;  %v1287_v19 = vld [vmem:[%s1781_s5 + $0xc0] sm:$0xff] }
 0x126   :  { %1206 = vmatprep.subr.mxu1 %v1129_v20  ;;  %1405 = vmatpush3.msra.mxu0 %v1273_v16  ;;  %v1271_v20 = vld [vmem:[%s1781_s5 + $0x40] sm:$0xff] }
 0x127   :  { %1207 = vmatpush1.msra.mxu1 %v1128_v21  ;;  %1406 = vmatprep.subr.mxu0 %v1288_v17  ;;  %v1286_v21 = vld [vmem:[%s1781_s5 + $0xb8] sm:$0xff] }
 0x128   :  { %1208 = vmatprep.subr.mxu1 %v1127_v22  ;;  %1407 = vmatpush3.msra.mxu0 %v1272_v18  ;;  %v1270_v22 = vld [vmem:[%s1781_s5 + $0x38] sm:$0xff]  ;;  %v1393_v18 = vld [vmem:[#allocation11] ss:$0 sm:$0xff] }
 0x129   :  { %1209 = vmatpush1.msra.mxu1 %v1126_v23  ;;  %1408 = vmatprep.subr.mxu0 %v1287_v19  ;;  %v1285_v23 = vld [vmem:[%s1781_s5 + $0xb0] sm:$0xff] }
 0x12a   :  { %1210 = vmatprep.subr.mxu1 %v1125_v24  ;;  %1409 = vmatpush3.msra.mxu0 %v1271_v20  ;;  %v1269_v24 = vld [vmem:[%s1781_s5 + $0x30] sm:$0xff] }
 0x12b   :  { %1211 = vmatpush1.msra.mxu1 %v1124_v25  ;;  %1410 = vmatprep.subr.mxu0 %v1286_v21  ;;  %v1284_v25 = vld [vmem:[%s1781_s5 + $0xa8] sm:$0xff] }
 0x12c   :  { %1212 = vmatprep.subr.mxu1 %v1123_v26  ;;  %1411 = vmatpush3.msra.mxu0 %v1270_v22  ;;  %v1268_v26 = vld [vmem:[%s1781_s5 + $0x28] sm:$0xff] }
 0x12d   :  { %1213 = vmatpush1.msra.mxu1 %v1122_v27  ;;  %1412 = vmatprep.subr.mxu0 %v1285_v23  ;;  %v1283_v27 = vld [vmem:[%s1781_s5 + $0xa0] sm:$0xff] }
 0x12e   :  { %1214 = vmatprep.subr.mxu1 %v1121_v28  ;;  %1413 = vmatpush3.msra.mxu0 %v1269_v24  ;;  %v1267_v28 = vld [vmem:[%s1781_s5 + $0x20] sm:$0xff] }
 0x12f   :  { %1215 = vmatpush1.msra.mxu1 %v1120_v29  ;;  %1414 = vmatprep.subr.mxu0 %v1284_v25  ;;  %v530_v29 = vsub.s32 0, %v1663_v44 }
 0x130   :  { %1216 = vmatprep.subr.mxu1 %v1119_v30  ;;  %1415 = vmatpush3.msra.mxu0 %v1268_v26  ;;  %v526_v30 = vld [vmem:[#allocation7] sm:$0x3] }
 0x131   :  { %1217 = vmatpush1.msra.mxu1 %v1118_v31  ;;  %1416 = vmatprep.subr.mxu0 %v1283_v27  ;;  %v534_v31 = vsub.s32 1, %v1663_v44  ;;  %v1183_v10 = vrot.slane %v1178_v9, %v530_v29 }
 0x132   :  { %1218 = vmatprep.subr.mxu1 %v1117_v32  ;;  %1417 = vmatpush3.msra.mxu0 %v1267_v28 }
 0x133   :  { %1219 = vmatpush1.msra.mxu1 %v1116_v33  ;;  %v531_v33 = vrot.slane %v526_v30, %v530_v29  ;;  %v1187_v11 = vrot.slane %v1178_v9, %v534_v31 }
 0x134   :  { %1220 = vmatprep.subr.mxu1 %v1115_v34  ;;  %v535_v34 = vrot.slane %v526_v30, %v534_v31 }
 0x135   :  { %1221 = vmatpush1.msra.mxu1 %v1114_v35 }
 0x136   :  { %1222 = vmatprep.subr.mxu1 %v1177_v36 }
 0x137   :  { %1223 = vmatpush2.msra.mxu1 %v1176_v37 }
 0x138   :  { %1224 = vmatprep.subr.mxu1 %v1175_v38 }
 0x139   :  { %1225 = vmatpush2.msra.mxu1 %v1174_v39 }
 0x13a   :  { %1226 = vmatprep.subr.mxu1 %v1173_v40 }
 0x13b   :  { %1227 = vmatpush2.msra.mxu1 %v1172_v41 }
 0x13c   :  { %1228 = vmatprep.subr.mxu1 %v1171_v42 }
 0x13d   :  { %1229 = vmatpush2.msra.mxu1 %v1170_v43 }
 0x13e   :  { %1230 = vmatprep.subr.mxu1 %v1169_v45 }
 0x13f   :  { %1231 = vmatpush2.msra.mxu1 %v1168_v46 }
 0x140   :  { %1232 = vmatprep.subr.mxu1 %v1167_v47 }
 0x141   :  { %1233 = vmatpush2.msra.mxu1 %v1166_v48 }
 0x142   :  { %1234 = vmatprep.subr.mxu1 %v1165_v49 }
 0x143   :  { %1235 = vmatpush2.msra.mxu1 %v1164_v50 }
 0x144   :  { %1236 = vmatprep.subr.mxu1 %v1163_v51 }
 0x145   :  { %1237 = vmatpush2.msra.mxu1 %v1162_v52 }
 0x146   :  { %1238 = vmatprep.subr.mxu1 %v1161_v53 }
 0x147   :  { %1239 = vmatpush2.msra.mxu1 %v1160_v54 }
 0x148   :  { %1240 = vmatprep.subr.mxu1 %v1159_v56 }
 0x149   :  { %1241 = vmatpush2.msra.mxu1 %v1158_v57 }
 0x14a   :  { %1242 = vmatprep.subr.mxu1 %v1157_v58 }
 0x14b   :  { %1243 = vmatpush2.msra.mxu1 %v1156_v59 }
 0x14c   :  { %1244 = vmatprep.subr.mxu1 %v1155_v60 }
 0x14d   :  { %1245 = vmatpush2.msra.mxu1 %v1154_v61  ;;  %v681_v32 = vpop.f32.mrf.mxu0 }
 0x14e   :  { %1246 = vmatprep.subr.mxu1 %v1153_v62  ;;  %v682_v37 = vadd.f32 %v681_v32, %v531_v33 }
 0x14f   :  { %1247 = vmatpush2.msra.mxu1 %v1152_v63  ;;  %v683_v35 = vpop.f32.mrf.mxu0 }
 0x150   :  { %1248 = vmatprep.subr.mxu1 %v1151_v0  ;;  %v752_v36 = vpop.f32.mrf.mxu1  ;;  %v684_v39 = vadd.f32 %v683_v35, %v535_v34 }
 0x151   :  { %1249 = vmatpush2.msra.mxu1 %v1150_v1  ;;  %v753_v41 = vadd.f32 %v752_v36, %v682_v37  ;;  %v1282_v1 = vld [vmem:[%s1781_s5 + $0x98] sm:$0xff] }
 0x152   :  { %1250 = vmatprep.subr.mxu1 %v1149_v2  ;;  %v754_v40 = vpop.f32.mrf.mxu1  ;;  %1418 = vmatprep.subr.mxu0 %v1282_v1  ;;  %v1266_v2 = vld [vmem:[%s1781_s5 + $0x18] sm:$0xff] }
 0x153   :  { %1251 = vmatpush2.msra.mxu1 %v1148_v3  ;;  %v755_v45 = vadd.f32 %v754_v40, %v684_v39  ;;  %1419 = vmatpush3.msra.mxu0 %v1266_v2  ;;  %v1281_v3 = vld [vmem:[%s1781_s5 + $0x90] sm:$0xff] }
 0x154   :  { %1252 = vmatprep.subr.mxu1 %v1147_v4  ;;  %1420 = vmatprep.subr.mxu0 %v1281_v3  ;;  %v1265_v4 = vld [vmem:[%s1781_s5 + $0x10] sm:$0xff] }
 0x155   :  { %1253 = vmatpush2.msra.mxu1 %v1146_v5  ;;  %1421 = vmatpush3.msra.mxu0 %v1265_v4  ;;  %v1280_v5 = vld [vmem:[%s1781_s5 + $0x88] sm:$0xff]  ;;  %s1562_s5 = scalar_lea.vmem %s1381_s14, 32 }
 0x156   :  { %1422 = vmatprep.subr.mxu0 %v1280_v5  ;;  %p1563_p2 = scmp.ne.s32.totalorder %s1381_s14, %s1562_s5  ;;  %p1568_p4 = scmp.lt.s32.totalorder %s1562_s5, %s1562_s5 }
 0x157   :  { %1423 = vmatpush3.msra.mxu0 %v1264_v6 }
 0x158   :  { %1424 = vmatprep.subr.mxu0 %v1279_v7  ;;  %p1569_p5 = por %p1568_p4, %p1567_p3 }
 0x159   :  { %1425 = vmatpush3.msra.mxu0 %v1263_v8 }
 0x15a   :  { %p1570_p6 = pnand %p1569_p5, %p1563_p2 }
 0x18f   :  { %v823_v38 = vpop.f32.mrf.mxu0 }
 0x190   :  { %v824_v46 = vadd.f32 %v823_v38, %v753_v41 }
 0x191   :  { %v825_v42 = vpop.f32.mrf.mxu0 }
 0x192   :  { %v894_v43 = vpop.f32.mrf.mxu1  ;;  %v826_v47 = vadd.f32 %v825_v42, %v755_v45 }
 0x193   :  { %v895_v50 = vadd.f32 %v894_v43, %v824_v46 }
 0x194   :  { %v896_v49 = vpop.f32.mrf.mxu1 }
 0x195   :  { %v897_v52 = vadd.f32 %v896_v49, %v826_v47 }
 0x1d1   :  { %v965_v48 = vpop.f32.mrf.mxu0 }
 0x1d2   :  { %v966_v53 = vadd.f32 %v965_v48, %v895_v50 }
 0x1d3   :  { %v967_v51 = vpop.f32.mrf.mxu0 }
 0x1d4   :  { %v1036_v44 = vpop.f32.mrf.mxu1  ;;  %v968_v54 = vadd.f32 %v967_v51, %v897_v52 }
 0x1d5   :  { %v1037_v57 = vadd.f32 %v1036_v44, %v966_v53 }
 0x1d6   :  { %v1038_v56 = vpop.f32.mrf.mxu1 }
 0x1d7   :  { %v1039_v59 = vadd.f32 %v1038_v56, %v968_v54 }
 0x1da   :  { %v1107_v58 = vpop.f32.mrf.mxu0 }
 0x1db   :  { %v1108_v60 = vadd.f32 %v1107_v58, %v1037_v57 }
 0x1dc   :  { %v1109_v61 = vpop.f32.mrf.mxu0 }
 0x1dd   :  { %v1110_v62 = vadd.f32 %v1109_v61, %v1039_v59  ;;  %v1112_v0 = vmax.f32 %v1108_v60, 0.0 }
 0x1df   :  { %v1113_v63 = vmax.f32 %v1110_v62, 0.0 }
 0x1e1   :  { %1254 = vmatprep.mubr.f32.mxu1 %v1113_v63 }
 0x1e2   :  { %1255 = vmatmul.mubr.f32.vlgmr.msra.gmra.mxu1 %v1112_v0 }
 0x2a2   :  { %v1256_v12 = vpop.f32.mrf.mxu1 }
 0x2a3   :  { %v1257_v13 = vadd.f32 %v1256_v12, %v1183_v10 }
 0x2a4   :  { %v1258_v14 = vpop.f32.mrf.mxu1 }
 0x2a5   :  { %v1259_v55 = vadd.f32 %v1258_v14, %v1187_v11  ;;  %v1261_v16 = vmax.f32 %v1257_v13, 0.0 }
 0x2a7   :  { %v1262_v15 = vmax.f32 %v1259_v55, 0.0 }
 0x2a9   :  { %1366 = vmatprep.mubr.f32.mxu0 %v1262_v15 }
 0x2aa   :  { %1367 = vmatmul.mubr.f32.vlgmr.msra.gmra.mxu0 %v1261_v16 }
 0x36a   :  { %v1426_v17 = vpop.f32.mrf.mxu0 }
 0x36c   :  { %v1427_v19 = vpop.f32.mrf.mxu0 }
 0x36d   :  { %v1428_v20 = vadd.f32 %v1427_v19, %v1426_v17 }
 0x36f   :  { %v1369_v21 = vadd.f32 %v1428_v20, %v1393_v18 }
 0x371   :  { %1373 = vst.msk [vmem:[#allocation13] sm:$0x3] %vm1372_vm1, %v1369_v21 }
 0x372   :  { %1573 = shalt.err (!%p1570_p6)
}
 0x373   :  { %1383 = dma.vmem_to_hbm [thread:$0]  %s1381_s14, 32, %s1783_s7, [#allocation4]  }
 0x374   :  { %1590 = dma.done.wait [#allocation4], 32  }
 0x375   :  { %1591 = vsyncadd [#allocation4], 4294967264 }
 0x376   :  { %1387 = vsyncpa [#allocation3], 1 }
 0x377   :  { %1388 = vsyncpa [#allocation6], 1 }
 0x378   :  { %1389 = vsyncpa [#allocation9], 1 }
 0x379   :  { %1390 = vsyncpa [#allocation12], 1 }
 0x37a   :  { %1391 = vsyncpa [#allocation4], 1 }

</bundles_post_ra>
